<compile_context>
chip_gen: v7x
topology: tpu7x:2x2x1
jax: 0.10.0
libtpu: 0.0.40
codegen_flags: <defaults>
</compile_context>

<pallas_src>
import functools

import jax
import jax.numpy as jnp
from jax.experimental import pallas as pl
from jax.experimental.pallas import tpu as pltpu


def _conv_pool_kernel(
    x_ref,                       # (B, 4, tile_len) bf16 channels-first tile
    w1_ref, t1_ref,              # conv1: folded weight (32, 4)   bf16, shift (32, 1)  f32
    w2_ref, t2_ref,              # conv2: folded weight (64, 32)  bf16, shift (64, 1)  f32
    w3_ref, t3_ref,              # conv3: folded weight (128, 64) bf16, shift (128, 1) f32
    w4_ref, t4_ref,              # conv4: folded weight (H, 128)  bf16, shift (H, 1)   f32
    part_ref,                    # (1, H, B) f32 per-chunk partial sums (accumulated in place)
    *, batch,
):
    t = pl.program_id(1)

    @pl.when(t == 0)
    def _init():
        part_ref[...] = jnp.zeros_like(part_ref)

    # Hoist resident weight / shift loads out of the per-batch loop.
    w1, s1 = w1_ref[...], t1_ref[...]
    w2, s2 = w2_ref[...], t2_ref[...]
    w3, s3 = w3_ref[...], t3_ref[...]
    w4, s4 = w4_ref[...], t4_ref[...]

    def conv_bn_relu(h_bf16, w, s):
        # kernel_size=1 Conv1d with eval-mode BN folded into the weight
        # (channels-first): relu(W @ h + shift); bf16 operands, f32 MXU accumulate.
        h = jnp.dot(w, h_bf16, preferred_element_type=jnp.float32)
        return jnp.maximum(h + s, 0.0)

    for b in range(batch):                               # static unroll, B small
        h = x_ref[b]                                     # (4, tile_len) bf16
        h = conv_bn_relu(h, w1, s1).astype(jnp.bfloat16) # (32, tile_len)
        h = conv_bn_relu(h, w2, s2).astype(jnp.bfloat16) # (64, tile_len)
        h = conv_bn_relu(h, w3, s3).astype(jnp.bfloat16) # (128, tile_len)
        h = conv_bn_relu(h, w4, s4)                      # (H, tile_len) f32
        # AdaptiveAvgPool1d partial sum over this tile (mean applied at finalize).
        col = jnp.sum(h, axis=1, keepdims=True)          # (H, 1) f32
        part_ref[0, :, b:b + 1] = part_ref[0, :, b:b + 1] + col


def _head_kernel(
    part_ref,                    # (num_chunks, H, B) f32 per-chunk pooled sums
    wl1_ref, bl1_ref,            # linear1 (128, H) bf16, bias (128, 1) f32
    wl2_ref, bl2_ref,            # linear2 (E, 128) bf16, bias (E, 1)   f32
    o_ref,                       # (E, B) f32 (transposed output; wrapper flips it)
    *, inv_seq_len,
):
    pooled = jnp.sum(part_ref[...], axis=0) * inv_seq_len          # (H, B) f32
    y = jnp.dot(wl1_ref[...], pooled.astype(jnp.bfloat16),
                preferred_element_type=jnp.float32) + bl1_ref[...]  # (128, B)
    y = jnp.maximum(y, 0.0)
    # nn.Dropout: identity in eval mode.
    y = jnp.dot(wl2_ref[...], y.astype(jnp.bfloat16),
                preferred_element_type=jnp.float32) + bl2_ref[...]  # (E, B)
    o_ref[...] = y.astype(o_ref.dtype)


def _choose_tiling(seq_len, *, max_tile=1024, target_chunks=2):
    """tile_len must be a multiple of 128 (lane-dense blocks) dividing L, or L
    itself.  Prefer the largest such tile (amortizes per-grid-step overhead)
    that still allows `target_chunks` parallel chunks (v7x megacore)."""
    cands = [t for t in range(128, min(seq_len, max_tile) + 1, 128)
             if seq_len % t == 0]
    if not cands:
        return seq_len, 1, 1                       # whole sequence in one block
    for t in sorted(cands, reverse=True):
        n_tiles = seq_len // t
        if n_tiles % target_chunks == 0:
            return t, target_chunks, n_tiles // target_chunks
    t = max(cands)
    return t, 1, seq_len // t


def dynamic_obstacle_embedding(x_ncl, params, *, embedding_dim,
                               tile_len=None, num_chunks=2):
    """x_ncl: (B, 4, L) float, native PyTorch NCL layout. Returns (B, embedding_dim)."""
    B, C, L = x_ncl.shape
    assert C == 4

    if tile_len is None:
        tile_len, num_chunks, tiles_per_chunk = _choose_tiling(
            L, target_chunks=num_chunks)
    else:
        assert L % tile_len == 0 and (tile_len % 128 == 0 or tile_len == L)
        n_tiles = L // tile_len
        if n_tiles % num_chunks != 0:
            num_chunks = 1
        tiles_per_chunk = (L // tile_len) // num_chunks

    (w1, t1, w2, t2, w3, t3, w4, t4, wl1, bl1, wl2, bl2) = params
    hidden = w4.shape[0]

    # bf16 matmul operands (f32 accumulate in-kernel); shifts/biases stay f32.
    x_bf = x_ncl.astype(jnp.bfloat16)            # halves x HBM traffic / DMA size
    bf16 = lambda w: w.astype(jnp.bfloat16)
    conv_params = (bf16(w1), t1, bf16(w2), t2, bf16(w3), t3, bf16(w4), t4)

    resident = lambda shape: pl.BlockSpec(shape, lambda c, t: (0, 0))  # stays in VMEM

    grid_spec = pltpu.PrefetchScalarGridSpec(
        num_scalar_prefetch=0,
        grid=(num_chunks, tiles_per_chunk),
        in_specs=[pl.BlockSpec((B, 4, tile_len),
                               lambda c, t: (0, 0, c * tiles_per_chunk + t))]
                 + [resident(p.shape) for p in conv_params],
        out_specs=pl.BlockSpec((1, hidden, B), lambda c, t: (c, 0, 0)),
    )
    conv_kernel = functools.partial(_conv_pool_kernel, batch=B)
    partials = pl.pallas_call(
        conv_kernel,
        out_shape=jax.ShapeDtypeStruct((num_chunks, hidden, B), jnp.float32),
        grid_spec=grid_spec,
        compiler_params=pltpu.CompilerParams(
            # Chunk axis is independent (v7x megacore); tile axis feeds the
            # pooled accumulator -> reduction axis.
            dimension_semantics=("parallel", "arbitrary"),
            # Explicit scoped-VMEM budget: below v7x's 64 MiB physical, above
            # the 16/32 MiB defaults, so tile_len up to ~1024 double-buffers.
            vmem_limit_bytes=48 * 1024 * 1024,
        ),
    )(x_bf, *conv_params)

    head_params = (bf16(wl1), bl1, bf16(wl2), bl2)
    head_spec = pltpu.PrefetchScalarGridSpec(
        num_scalar_prefetch=0,
        grid=(1,),
        in_specs=[pl.BlockSpec((num_chunks, hidden, B), lambda i: (0, 0, 0))]
                 + [pl.BlockSpec(p.shape, lambda i: (0, 0)) for p in head_params],
        out_specs=pl.BlockSpec((embedding_dim, B), lambda i: (0, 0)),
    )
    head_kernel = functools.partial(_head_kernel, inv_seq_len=1.0 / L)
    out_eb = pl.pallas_call(
        head_kernel,
        out_shape=jax.ShapeDtypeStruct((embedding_dim, B), jnp.float32),
        grid_spec=head_spec,
    )(partials, *head_params)

    return out_eb.T                                   # (B, embedding_dim)


def make_params(key, embedding_dim, hidden_channels=256, eps=1e-5):
    """Deterministic synthetic parameters in native PyTorch (out, in) layouts,
    with eval-mode BatchNorm folded into each conv weight: (w_folded, shift)."""
    dims = [4, 32, 64, 128, hidden_channels]
    params = []
    keys = jax.random.split(key, 16)
    ki = 0
    for i in range(4):
        cin, cout = dims[i], dims[i + 1]
        w = jax.random.normal(keys[ki], (cout, cin), jnp.float32) * 0.1; ki += 1
        gamma = 1.0 + 0.1 * jax.random.normal(keys[ki], (cout,), jnp.float32); ki += 1
        beta = 0.1 * jax.random.normal(keys[ki], (cout,), jnp.float32); ki += 1
        run_mean = jnp.zeros((cout,), jnp.float32)
        run_var = jnp.ones((cout,), jnp.float32)
        scale = gamma / jnp.sqrt(run_var + eps)
        shift = beta - run_mean * scale
        # Fold the BN scale into the conv weight; keep only the additive shift.
        params += [w * scale[:, None], shift.reshape(cout, 1)]
    wl1 = jax.random.normal(keys[ki], (128, hidden_channels), jnp.float32) * 0.05; ki += 1
    bl1 = 0.01 * jax.random.normal(keys[ki], (128,), jnp.float32); ki += 1
    wl2 = jax.random.normal(keys[ki], (embedding_dim, 128), jnp.float32) * 0.05; ki += 1
    bl2 = 0.01 * jax.random.normal(keys[ki], (embedding_dim,), jnp.float32); ki += 1
    params += [wl1, bl1.reshape(128, 1), wl2, bl2.reshape(embedding_dim, 1)]
    return tuple(params)


def reference_forward(x_ncl, params):
    """Plain-JAX f32 reference of the PyTorch forward (eval mode, BN folded)."""
    w1, t1, w2, t2, w3, t3, w4, t4, wl1, bl1, wl2, bl2 = params
    h = x_ncl                                                   # (B, 4, L)
    for w, t in ((w1, t1), (w2, t2), (w3, t3), (w4, t4)):
        h = jnp.maximum(jnp.einsum('oc,bcl->bol', w, h) + t[None], 0.0)
    pooled = jnp.mean(h, axis=2)                                # (B, H)
    y = jnp.maximum(pooled @ wl1.T + bl1[:, 0], 0.0)
    return y @ wl2.T + bl2[:, 0]                                # (B, E)


if __name__ == "__main__":
    embedding_dim = 32
    hidden_channels = 256
    B, C, L = 2, 4, 512

    key = jax.random.PRNGKey(0)
    kx, kp = jax.random.split(key)
    x = jax.random.normal(kx, (B, C, L), jnp.float32)
    params = make_params(kp, embedding_dim, hidden_channels)

    # tile_len=128, num_chunks=2 -> grid (2, 2): exercises the parallel chunk
    # axis and the init/accumulate path along the "arbitrary" tile axis.
    out = dynamic_obstacle_embedding(x, params, embedding_dim=embedding_dim,
                                     tile_len=128, num_chunks=2)
    out = jax.block_until_ready(out)

    ref = reference_forward(x, params)
    assert out.shape == (B, embedding_dim)
    # bf16 matmul operands (f32 accumulate) vs f32 reference -> loosened tolerance.
    assert jnp.allclose(out, ref, atol=2e-2, rtol=2e-2), "mismatch vs reference"
    print("KERNEL_OK")
</pallas_src>

<mosaic_0001>
module attributes {stable_mosaic.version = 11 : i64} {
  func.func @_conv_pool_kernel(%arg0: i32, %arg1: i32, %arg2: memref<2x4x128xbf16, #tpu.memory_space<vmem>>, %arg3: memref<32x4xbf16, #tpu.memory_space<vmem>>, %arg4: memref<32x1xf32, #tpu.memory_space<vmem>>, %arg5: memref<64x32xbf16, #tpu.memory_space<vmem>>, %arg6: memref<64x1xf32, #tpu.memory_space<vmem>>, %arg7: memref<128x64xbf16, #tpu.memory_space<vmem>>, %arg8: memref<128x1xf32, #tpu.memory_space<vmem>>, %arg9: memref<256x128xbf16, #tpu.memory_space<vmem>>, %arg10: memref<256x1xf32, #tpu.memory_space<vmem>>, %arg11: memref<1x256x2xf32, #tpu.memory_space<vmem>>) attributes {dimension_semantics = [#tpu.dimension_semantics<parallel>, #tpu.dimension_semantics<arbitrary>], iteration_bounds = array<i64: 2, 2>, scalar_prefetch = 0 : i64, scratch_operands = 0 : i64, tpu.core_type = #tpu.core_type<tc>, window_params = [{transform_indices = @transform_0, window_bounds = array<i64: 2, 4, 128>}, {pipeline_mode = #tpu.pipeline_mode<synchronous>, transform_indices = @transform_1, window_bounds = array<i64: 32, 4>}, {pipeline_mode = #tpu.pipeline_mode<synchronous>, transform_indices = @transform_2, window_bounds = array<i64: 32, 1>}, {pipeline_mode = #tpu.pipeline_mode<synchronous>, transform_indices = @transform_3, window_bounds = array<i64: 64, 32>}, {pipeline_mode = #tpu.pipeline_mode<synchronous>, transform_indices = @transform_4, window_bounds = array<i64: 64, 1>}, {pipeline_mode = #tpu.pipeline_mode<synchronous>, transform_indices = @transform_5, window_bounds = array<i64: 128, 64>}, {pipeline_mode = #tpu.pipeline_mode<synchronous>, transform_indices = @transform_6, window_bounds = array<i64: 128, 1>}, {pipeline_mode = #tpu.pipeline_mode<synchronous>, transform_indices = @transform_7, window_bounds = array<i64: 256, 128>}, {pipeline_mode = #tpu.pipeline_mode<synchronous>, transform_indices = @transform_8, window_bounds = array<i64: 256, 1>}, {transform_indices = @transform_9, window_bounds = array<i64: 1, 256, 2>}]} {
    %c0_i32 = arith.constant 0 : i32
    %0 = arith.cmpi eq, %arg1, %c0_i32 : i32
    %1 = arith.extui %0 : i1 to i32
    %c0_i32_0 = arith.constant 0 : i32
    %2 = arith.cmpi ne, %1, %c0_i32_0 : i32
    scf.if %2 {
      %cst_50 = arith.constant 0.000000e+00 : f32
      %77 = vector.broadcast %cst_50 : f32 to vector<1x256x2xf32>
      %c0_51 = arith.constant 0 : index
      %c0_52 = arith.constant 0 : index
      %c0_53 = arith.constant 0 : index
      %78 = vector.load %arg11[%c0_51, %c0_52, %c0_53] : memref<1x256x2xf32, #tpu.memory_space<vmem>>, vector<1x256x2xf32>
      tpu.vector_store %arg11[%c0_51, %c0_52, %c0_53], %77 {strides = array<i32>} : memref<1x256x2xf32, #tpu.memory_space<vmem>>, vector<1x256x2xf32>,
    } else {
    }
    %c0 = arith.constant 0 : index
    %c0_1 = arith.constant 0 : index
    %3 = vector.load %arg3[%c0, %c0_1] : memref<32x4xbf16, #tpu.memory_space<vmem>>, vector<32x4xbf16>
    %c0_2 = arith.constant 0 : index
    %c0_3 = arith.constant 0 : index
    %4 = vector.load %arg4[%c0_2, %c0_3] : memref<32x1xf32, #tpu.memory_space<vmem>>, vector<32x1xf32>
    %c0_4 = arith.constant 0 : index
    %c0_5 = arith.constant 0 : index
    %5 = vector.load %arg5[%c0_4, %c0_5] : memref<64x32xbf16, #tpu.memory_space<vmem>>, vector<64x32xbf16>
    %c0_6 = arith.constant 0 : index
    %c0_7 = arith.constant 0 : index
    %6 = vector.load %arg6[%c0_6, %c0_7] : memref<64x1xf32, #tpu.memory_space<vmem>>, vector<64x1xf32>
    %c0_8 = arith.constant 0 : index
    %c0_9 = arith.constant 0 : index
    %7 = vector.load %arg7[%c0_8, %c0_9] : memref<128x64xbf16, #tpu.memory_space<vmem>>, vector<128x64xbf16>
    %c0_10 = arith.constant 0 : index
    %c0_11 = arith.constant 0 : index
    %8 = vector.load %arg8[%c0_10, %c0_11] : memref<128x1xf32, #tpu.memory_space<vmem>>, vector<128x1xf32>
    %c0_12 = arith.constant 0 : index
    %c0_13 = arith.constant 0 : index
    %9 = vector.load %arg9[%c0_12, %c0_13] : memref<256x128xbf16, #tpu.memory_space<vmem>>, vector<256x128xbf16>
    %c0_14 = arith.constant 0 : index
    %c0_15 = arith.constant 0 : index
    %10 = vector.load %arg10[%c0_14, %c0_15] : memref<256x1xf32, #tpu.memory_space<vmem>>, vector<256x1xf32>
    %c0_16 = arith.constant 0 : index
    %c0_17 = arith.constant 0 : index
    %c0_18 = arith.constant 0 : index
    %11 = vector.load %arg2[%c0_16, %c0_17, %c0_18] : memref<2x4x128xbf16, #tpu.memory_space<vmem>>, vector<1x4x128xbf16>
    %12 = vector.shape_cast %11 : vector<1x4x128xbf16> to vector<4x128xbf16>
    %cst = arith.constant dense<0.000000e+00> : vector<32x128xf32>
    %13 = tpu.matmul %3, %12, %cst {dimension_numbers = #tpu.dot_dimension_numbers<[1], [0], [0], [1], [0, 0, 1, 1], [], []>} : vector<32x4xbf16>, vector<4x128xbf16>, vector<32x128xf32> -> vector<32x128xf32>
    %14 = vector.broadcast %4 : vector<32x1xf32> to vector<32x128xf32>
    %15 = arith.addf %13, %14 : vector<32x128xf32>
    %cst_19 = arith.constant 0.000000e+00 : f32
    %16 = vector.broadcast %cst_19 : f32 to vector<32x128xf32>
    %17 = arith.maximumf %15, %16 : vector<32x128xf32>
    %18 = arith.truncf %17 : vector<32x128xf32> to vector<32x128xbf16>
    %cst_20 = arith.constant dense<0.000000e+00> : vector<64x128xf32>
    %19 = tpu.matmul %5, %18, %cst_20 {dimension_numbers = #tpu.dot_dimension_numbers<[1], [0], [0], [1], [0, 0, 1, 1], [], []>} : vector<64x32xbf16>, vector<32x128xbf16>, vector<64x128xf32> -> vector<64x128xf32>
    %20 = vector.broadcast %6 : vector<64x1xf32> to vector<64x128xf32>
    %21 = arith.addf %19, %20 : vector<64x128xf32>
    %cst_21 = arith.constant 0.000000e+00 : f32
    %22 = vector.broadcast %cst_21 : f32 to vector<64x128xf32>
    %23 = arith.maximumf %21, %22 : vector<64x128xf32>
    %24 = arith.truncf %23 : vector<64x128xf32> to vector<64x128xbf16>
    %cst_22 = arith.constant dense<0.000000e+00> : vector<128x128xf32>
    %25 = tpu.matmul %7, %24, %cst_22 {dimension_numbers = #tpu.dot_dimension_numbers<[1], [0], [0], [1], [0, 0, 1, 1], [], []>} : vector<128x64xbf16>, vector<64x128xbf16>, vector<128x128xf32> -> vector<128x128xf32>
    %26 = vector.broadcast %8 : vector<128x1xf32> to vector<128x128xf32>
    %27 = arith.addf %25, %26 : vector<128x128xf32>
    %cst_23 = arith.constant 0.000000e+00 : f32
    %28 = vector.broadcast %cst_23 : f32 to vector<128x128xf32>
    %29 = arith.maximumf %27, %28 : vector<128x128xf32>
    %30 = arith.truncf %29 : vector<128x128xf32> to vector<128x128xbf16>
    %cst_24 = arith.constant dense<0.000000e+00> : vector<256x128xf32>
    %31 = tpu.matmul %9, %30, %cst_24 {dimension_numbers = #tpu.dot_dimension_numbers<[1], [0], [0], [1], [0, 0, 1, 1], [], []>} : vector<256x128xbf16>, vector<128x128xbf16>, vector<256x128xf32> -> vector<256x128xf32>
    %32 = vector.broadcast %10 : vector<256x1xf32> to vector<256x128xf32>
    %33 = arith.addf %31, %32 : vector<256x128xf32>
    %cst_25 = arith.constant 0.000000e+00 : f32
    %34 = vector.broadcast %cst_25 : f32 to vector<256x128xf32>
    %35 = arith.maximumf %33, %34 : vector<256x128xf32>
    %cst_26 = arith.constant dense<0.000000e+00> : vector<256xf32>
    %36 = vector.multi_reduction <add>, %35, %cst_26 [1] : vector<256x128xf32> to vector<256xf32>
    %37 = vector.shape_cast %36 : vector<256xf32> to vector<256x1xf32>
    %c0_27 = arith.constant 0 : index
    %c0_28 = arith.constant 0 : index
    %c0_29 = arith.constant 0 : index
    %38 = vector.load %arg11[%c0_27, %c0_28, %c0_29] : memref<1x256x2xf32, #tpu.memory_space<vmem>>, vector<1x256x1xf32>
    %39 = vector.shape_cast %38 : vector<1x256x1xf32> to vector<256x1xf32>
    %40 = arith.addf %39, %37 : vector<256x1xf32>
    %c0_30 = arith.constant 0 : index
    %c0_31 = arith.constant 0 : index
    %c0_32 = arith.constant 0 : index
    %41 = vector.load %arg11[%c0_30, %c0_31, %c0_32] : memref<1x256x2xf32, #tpu.memory_space<vmem>>, vector<1x256x1xf32>
    %42 = vector.shape_cast %41 : vector<1x256x1xf32> to vector<256x1xf32>
    %43 = vector.shape_cast %40 : vector<256x1xf32> to vector<1x256x1xf32>
    tpu.vector_store %arg11[%c0_30, %c0_31, %c0_32], %43 {strides = array<i32>} : memref<1x256x2xf32, #tpu.memory_space<vmem>>, vector<1x256x1xf32>,
    %c1 = arith.constant 1 : index
    %c0_33 = arith.constant 0 : index
    %c0_34 = arith.constant 0 : index
    %44 = vector.load %arg2[%c1, %c0_33, %c0_34] : memref<2x4x128xbf16, #tpu.memory_space<vmem>>, vector<1x4x128xbf16>
    %45 = vector.shape_cast %44 : vector<1x4x128xbf16> to vector<4x128xbf16>
    %cst_35 = arith.constant dense<0.000000e+00> : vector<32x128xf32>
    %46 = tpu.matmul %3, %45, %cst_35 {dimension_numbers = #tpu.dot_dimension_numbers<[1], [0], [0], [1], [0, 0, 1, 1], [], []>} : vector<32x4xbf16>, vector<4x128xbf16>, vector<32x128xf32> -> vector<32x128xf32>
    %47 = vector.broadcast %4 : vector<32x1xf32> to vector<32x128xf32>
    %48 = arith.addf %46, %47 : vector<32x128xf32>
    %cst_36 = arith.constant 0.000000e+00 : f32
    %49 = vector.broadcast %cst_36 : f32 to vector<32x128xf32>
    %50 = arith.maximumf %48, %49 : vector<32x128xf32>
    %51 = arith.truncf %50 : vector<32x128xf32> to vector<32x128xbf16>
    %cst_37 = arith.constant dense<0.000000e+00> : vector<64x128xf32>
    %52 = tpu.matmul %5, %51, %cst_37 {dimension_numbers = #tpu.dot_dimension_numbers<[1], [0], [0], [1], [0, 0, 1, 1], [], []>} : vector<64x32xbf16>, vector<32x128xbf16>, vector<64x128xf32> -> vector<64x128xf32>
    %53 = vector.broadcast %6 : vector<64x1xf32> to vector<64x128xf32>
    %54 = arith.addf %52, %53 : vector<64x128xf32>
    %cst_38 = arith.constant 0.000000e+00 : f32
    %55 = vector.broadcast %cst_38 : f32 to vector<64x128xf32>
    %56 = arith.maximumf %54, %55 : vector<64x128xf32>
    %57 = arith.truncf %56 : vector<64x128xf32> to vector<64x128xbf16>
    %cst_39 = arith.constant dense<0.000000e+00> : vector<128x128xf32>
    %58 = tpu.matmul %7, %57, %cst_39 {dimension_numbers = #tpu.dot_dimension_numbers<[1], [0], [0], [1], [0, 0, 1, 1], [], []>} : vector<128x64xbf16>, vector<64x128xbf16>, vector<128x128xf32> -> vector<128x128xf32>
    %59 = vector.broadcast %8 : vector<128x1xf32> to vector<128x128xf32>
    %60 = arith.addf %58, %59 : vector<128x128xf32>
    %cst_40 = arith.constant 0.000000e+00 : f32
    %61 = vector.broadcast %cst_40 : f32 to vector<128x128xf32>
    %62 = arith.maximumf %60, %61 : vector<128x128xf32>
    %63 = arith.truncf %62 : vector<128x128xf32> to vector<128x128xbf16>
    %cst_41 = arith.constant dense<0.000000e+00> : vector<256x128xf32>
    %64 = tpu.matmul %9, %63, %cst_41 {dimension_numbers = #tpu.dot_dimension_numbers<[1], [0], [0], [1], [0, 0, 1, 1], [], []>} : vector<256x128xbf16>, vector<128x128xbf16>, vector<256x128xf32> -> vector<256x128xf32>
    %65 = vector.broadcast %10 : vector<256x1xf32> to vector<256x128xf32>
    %66 = arith.addf %64, %65 : vector<256x128xf32>
    %cst_42 = arith.constant 0.000000e+00 : f32
    %67 = vector.broadcast %cst_42 : f32 to vector<256x128xf32>
    %68 = arith.maximumf %66, %67 : vector<256x128xf32>
    %cst_43 = arith.constant dense<0.000000e+00> : vector<256xf32>
    %69 = vector.multi_reduction <add>, %68, %cst_43 [1] : vector<256x128xf32> to vector<256xf32>
    %70 = vector.shape_cast %69 : vector<256xf32> to vector<256x1xf32>
    %c0_44 = arith.constant 0 : index
    %c0_45 = arith.constant 0 : index
    %c1_46 = arith.constant 1 : index
    %71 = vector.load %arg11[%c0_44, %c0_45, %c1_46] : memref<1x256x2xf32, #tpu.memory_space<vmem>>, vector<1x256x1xf32>
    %72 = vector.shape_cast %71 : vector<1x256x1xf32> to vector<256x1xf32>
    %73 = arith.addf %72, %70 : vector<256x1xf32>
    %c0_47 = arith.constant 0 : index
    %c0_48 = arith.constant 0 : index
    %c1_49 = arith.constant 1 : index
    %74 = vector.load %arg11[%c0_47, %c0_48, %c1_49] : memref<1x256x2xf32, #tpu.memory_space<vmem>>, vector<1x256x1xf32>
    %75 = vector.shape_cast %74 : vector<1x256x1xf32> to vector<256x1xf32>
    %76 = vector.shape_cast %73 : vector<256x1xf32> to vector<1x256x1xf32>
    tpu.vector_store %arg11[%c0_47, %c0_48, %c1_49], %76 {strides = array<i32>} : memref<1x256x2xf32, #tpu.memory_space<vmem>>, vector<1x256x1xf32>,
    return
  }
  func.func @transform_0(%arg0: i32, %arg1: i32) -> (i32, i32, i32) {
    %c2_i32 = arith.constant 2 : i32
    %0 = arith.muli %arg0, %c2_i32 : i32
    %1 = arith.addi %0, %arg1 : i32
    %c0_i32 = arith.constant 0 : i32
    %c0_i32_0 = arith.constant 0 : i32
    %c0_i32_1 = arith.constant 0 : i32
    return %c0_i32, %c0_i32_0, %1 : i32, i32, i32
  }
  func.func @transform_1(%arg0: i32, %arg1: i32) -> (i32, i32) {
    %c0_i32 = arith.constant 0 : i32
    %c0_i32_0 = arith.constant 0 : i32
    %c0_i32_1 = arith.constant 0 : i32
    return %c0_i32, %c0_i32_0 : i32, i32
  }
  func.func @transform_2(%arg0: i32, %arg1: i32) -> (i32, i32) {
    %c0_i32 = arith.constant 0 : i32
    %c0_i32_0 = arith.constant 0 : i32
    %c0_i32_1 = arith.constant 0 : i32
    return %c0_i32, %c0_i32_0 : i32, i32
  }
  func.func @transform_3(%arg0: i32, %arg1: i32) -> (i32, i32) {
    %c0_i32 = arith.constant 0 : i32
    %c0_i32_0 = arith.constant 0 : i32
    %c0_i32_1 = arith.constant 0 : i32
    return %c0_i32, %c0_i32_0 : i32, i32
  }
  func.func @transform_4(%arg0: i32, %arg1: i32) -> (i32, i32) {
    %c0_i32 = arith.constant 0 : i32
    %c0_i32_0 = arith.constant 0 : i32
    %c0_i32_1 = arith.constant 0 : i32
    return %c0_i32, %c0_i32_0 : i32, i32
  }
  func.func @transform_5(%arg0: i32, %arg1: i32) -> (i32, i32) {
    %c0_i32 = arith.constant 0 : i32
    %c0_i32_0 = arith.constant 0 : i32
    %c0_i32_1 = arith.constant 0 : i32
    return %c0_i32, %c0_i32_0 : i32, i32
  }
  func.func @transform_6(%arg0: i32, %arg1: i32) -> (i32, i32) {
    %c0_i32 = arith.constant 0 : i32
    %c0_i32_0 = arith.constant 0 : i32
    %c0_i32_1 = arith.constant 0 : i32
    return %c0_i32, %c0_i32_0 : i32, i32
  }
  func.func @transform_7(%arg0: i32, %arg1: i32) -> (i32, i32) {
    %c0_i32 = arith.constant 0 : i32
    %c0_i32_0 = arith.constant 0 : i32
    %c0_i32_1 = arith.constant 0 : i32
    return %c0_i32, %c0_i32_0 : i32, i32
  }
  func.func @transform_8(%arg0: i32, %arg1: i32) -> (i32, i32) {
    %c0_i32 = arith.constant 0 : i32
    %c0_i32_0 = arith.constant 0 : i32
    %c0_i32_1 = arith.constant 0 : i32
    return %c0_i32, %c0_i32_0 : i32, i32
  }
  func.func @transform_9(%arg0: i32, %arg1: i32) -> (i32, i32, i32) {
    %c0_i32 = arith.constant 0 : i32
    %c0_i32_0 = arith.constant 0 : i32
    %c0_i32_1 = arith.constant 0 : i32
    return %arg0, %c0_i32, %c0_i32_0 : i32, i32, i32
  }
}

</mosaic_0001>

<bundles_post_ra>
// kernel: tpu_custom_call.1
= control target key start
LH: loop header
LB: loop body
LE: loop exit
PB: predicated region body
PF: predicated region fallthrough
CT: control target
= control target key end

     0   :  { %s2920_s30 = smov 0   ;;  %s2922_s10 = smov 0   ;;  %s3961_s0 = inlined_call_operand.vmem [shape: bf16[2,4,512], index: 0, kind: input, shape index: {}]   ;;  %s3962_s1 = inlined_call_operand.vmem [shape: bf16[32,4], index: 1, kind: input, shape index: {}]   ;;  %s3963_s2 = inlined_call_operand.vmem [shape: f32[32,1], index: 2, kind: input, shape index: {}]   ;;  %s3964_s3 = inlined_call_operand.vmem [shape: bf16[64,32], index: 3, kind: input, shape index: {}]   ;;  %s3965_s4 = inlined_call_operand.vmem [shape: f32[64,1], index: 4, kind: input, shape index: {}]   ;;  %s3966_s5 = inlined_call_operand.vmem [shape: bf16[128,64], index: 5, kind: input, shape index: {}]   ;;  %s3967_s6 = inlined_call_operand.vmem [shape: f32[128,1], index: 6, kind: input, shape index: {}]   ;;  %s3968_s7 = inlined_call_operand.vmem [shape: bf16[256,128], index: 7, kind: input, shape index: {}]   ;;  %s3969_s8 = inlined_call_operand.vmem [shape: f32[256,1], index: 8, kind: input, shape index: {}]   ;;  %s3970_s9 = inlined_call_operand.vmem [shape: f32[2,256,2], index: 9, kind: output, shape index: {}]  }
   0x1   :  { %s2924_s11 = smov 0   ;;  %s2926_s12 = smov 0  }
   0x2   :  { %s2928_s13 = smov 0   ;;  %s2930_s14 = smov 0  }
   0x3   :  { %s2932_s15 = smov 0  }
   0x4 LB: > { %4020 = sst [smem:[#allocation3_spill]] %s2862_s14  ;;  %s28_s16 = sadd.s32 1, %s2858_s13  ;;  %s2866_s15 = sphi %s2932_s15, %s19_s15   ;;  %s2862_s14 = sphi %s2930_s14, %s4122_s14   ;;  %s2858_s13 = sphi %s2928_s13, %s4121_s13   ;;  %s2854_s12 = sphi %s2926_s12, %s4117_s12   ;;  %s2850_s11 = sphi %s2924_s11, %s4120_s11   ;;  %s2846_s10 = sphi %s2922_s10, %s4119_s10   ;;  %s2842_s30 = sphi %s2920_s30, %s4118_s30  }
   0x5   : > { %p29_p0 = scmp.ge.s32.totalorder %s28_s16, 2  ;;  %s31_s17 = sadd.s32 1, %s2862_s14 }
   0x6   : > { %p49_p1 = scmp.ne.s32.totalorder %s2846_s10, %s2842_s30  ;;  %p50_p2 = scmp.eq.s32.totalorder %s2866_s15, 0 }
   0x7   : > { %s4124_s16 = smov (%p29_p0, %s28_s16), 0  ;;  %s4126_s17 = smov (!%p29_p0, %s31_s17), %s2862_s14 }
   0x8   : > { %p33_p3 = scmp.ge.s32.totalorder %s4126_s17, 2  ;;  %s2359_s18 = sshll.u32 %s2862_s14, 1 }
   0x9   : > { %p51_p4 = por %p50_p2, %p49_p1  ;;  %s36_s19 = sadd.s32 %s2858_s13, %s2359_s18 }
   0xa   : > { %s4128_s17 = smov (%p33_p3, %s4126_s17), 0  ;;  %s42_s23 = sadd.s32 1, %s2846_s10 }
   0xb   : > { %s2360_s20 = sshll.u32 %s4128_s17, 1  ;;  %p2362_p6 = scmp.ge.s32.totalorder %s2866_s15, 4 }
   0xc   : > { %s38_s21 = sadd.s32 %s2360_s20, %s4124_s16 }
   0xd   : > { %s39_s22 = ssub.s32 %s36_s19, %s38_s21  ;;  %293 = sbr.rel (%p2362_p6) target bundleno = 27 (0x1b), region = 48 }
   0xe   : > { %p40_p5 = scmp.eq.s32.totalorder %s39_s22, 0 }
  0x10   : > { %s2971_s24 = scalar_select %p40_p5, %s2846_s10, %s42_s23  }
  0x14   : > { %296 = sbr.rel (!%p51_p4) target bundleno = 27 (0x1b), region = 52  ;;  %s298_s25 = sand.u32 (%p51_p4), 1, %s2846_s10  }
  0x15   : > { %s2365_s26 = sshll.u32 (%p51_p4), %s36_s19, 1  ;;  %s2363_s27 = sshll.u32 (%p51_p4), %s298_s25, 2 }
  0x16   : > { %s304_s14 = scalar_lea.vmem (%p51_p4), %s3961_s0, %s2365_s26  ;;  %s300_s18 = scalar_lea.vmem (%p51_p4), [#allocation2], %s2363_s27 }
  0x17   : > { %v320_v0 = vld [vmem:[%s304_s14] sm:$0x3] (%p51_p4)  ;;  %v322_v1 = vld [vmem:[%s304_s14 + $0x8] sm:$0x3] (%p51_p4) }
  0x18   : > { %321 = vst [vmem:[%s300_s18] sm:$0x3] (%p51_p4), %v320_v0  ;;  %323 = vst [vmem:[%s300_s18 + $0x2] sm:$0x3] (%p51_p4), %v322_v1 }
  0x1b PF: > { %p2366_p7 = scmp.ge.s32.totalorder %s2866_s15, 1  ;;  %p341_p8 = scmp.lt.s32.totalorder %s2866_s15, 5 }
  0x1d   : > { %p342_p9 = pnand %p2366_p7, %p341_p8 }
  0x1f   : > { %345 = sbr.rel (%p342_p9) target bundleno = 1959 (0x7a7), region = 86 }
  0x26   : > { %s348_s19 = sand.u32 1, %s2842_s30   ;;  %p385_p10 = scmp.lt.s32.totalorder %s2854_s12, 1 }
  0x27   : > { %s2982_s20 = sshll.u32 %s348_s19, 2  ;;  %p2370_p11 = scmp.ne.s32.totalorder %s2850_s11, 0 }
  0x28   : > { %s4130_s12 = smov (!%p385_p10, %s2854_s12), 1  ;;  %s350_s25 = scalar_lea.vmem [#allocation2], %s2982_s20  ;;  %vm395_vm0 = vcmask (!%p2370_p11), 15360   ;;  %v2868_v2 = vmov (!%p2370_p11), 0.0  }
  0x29   : > { %s2432_s14 = sshll.u32 %s4130_s12, 8  ;;  %394 = sbr.rel (%p2370_p11) target bundleno = 59 (0x3b), region = 94 }
  0x2a   : > { %s2988_s23 = scalar_lea.vmem %s3970_s9, %s2432_s14 }
  0x2b   : > { %396 = vst.msk [vmem:[%s2988_s23] sm:$0xff] (!%p2370_p11), %vm395_vm0, %v2868_v2  ;;  %397 = vst.msk [vmem:[%s2988_s23 + $0x8] sm:$0xff] (!%p2370_p11), %vm395_vm0, %v2868_v2 }
  0x2c   : > { %398 = vst.msk [vmem:[%s2988_s23 + $0x10] sm:$0xff] (!%p2370_p11), %vm395_vm0, %v2868_v2  ;;  %399 = vst.msk [vmem:[%s2988_s23 + $0x18] sm:$0xff] (!%p2370_p11), %vm395_vm0, %v2868_v2 }
  0x2d   : > { %400 = vst.msk [vmem:[%s2988_s23 + $0x20] sm:$0xff] (!%p2370_p11), %vm395_vm0, %v2868_v2  ;;  %401 = vst.msk [vmem:[%s2988_s23 + $0x28] sm:$0xff] (!%p2370_p11), %vm395_vm0, %v2868_v2 }
  0x2e   : > { %402 = vst.msk [vmem:[%s2988_s23 + $0x30] sm:$0xff] (!%p2370_p11), %vm395_vm0, %v2868_v2  ;;  %403 = vst.msk [vmem:[%s2988_s23 + $0x38] sm:$0xff] (!%p2370_p11), %vm395_vm0, %v2868_v2 }
  0x2f   : > { %404 = vst.msk [vmem:[%s2988_s23 + $0x40] sm:$0xff] (!%p2370_p11), %vm395_vm0, %v2868_v2  ;;  %405 = vst.msk [vmem:[%s2988_s23 + $0x48] sm:$0xff] (!%p2370_p11), %vm395_vm0, %v2868_v2 }
  0x30   : > { %406 = vst.msk [vmem:[%s2988_s23 + $0x50] sm:$0xff] %vm395_vm0, %v2868_v2  ;;  %407 = vst.msk [vmem:[%s2988_s23 + $0x58] sm:$0xff] %vm395_vm0, %v2868_v2 }
  0x31   : > { %408 = vst.msk [vmem:[%s2988_s23 + $0x60] sm:$0xff] %vm395_vm0, %v2868_v2  ;;  %409 = vst.msk [vmem:[%s2988_s23 + $0x68] sm:$0xff] %vm395_vm0, %v2868_v2 }
  0x32   : > { %410 = vst.msk [vmem:[%s2988_s23 + $0x70] sm:$0xff] %vm395_vm0, %v2868_v2  ;;  %411 = vst.msk [vmem:[%s2988_s23 + $0x78] sm:$0xff] %vm395_vm0, %v2868_v2 }
  0x33   : > { %412 = vst.msk [vmem:[%s2988_s23 + $0x80] sm:$0xff] %vm395_vm0, %v2868_v2  ;;  %413 = vst.msk [vmem:[%s2988_s23 + $0x88] sm:$0xff] %vm395_vm0, %v2868_v2 }
  0x34   : > { %414 = vst.msk [vmem:[%s2988_s23 + $0x90] sm:$0xff] %vm395_vm0, %v2868_v2  ;;  %415 = vst.msk [vmem:[%s2988_s23 + $0x98] sm:$0xff] %vm395_vm0, %v2868_v2 }
  0x35   : > { %416 = vst.msk [vmem:[%s2988_s23 + $0xa0] sm:$0xff] %vm395_vm0, %v2868_v2  ;;  %417 = vst.msk [vmem:[%s2988_s23 + $0xa8] sm:$0xff] %vm395_vm0, %v2868_v2 }
  0x36   : > { %418 = vst.msk [vmem:[%s2988_s23 + $0xb0] sm:$0xff] %vm395_vm0, %v2868_v2  ;;  %419 = vst.msk [vmem:[%s2988_s23 + $0xb8] sm:$0xff] %vm395_vm0, %v2868_v2 }
  0x37   : > { %420 = vst.msk [vmem:[%s2988_s23 + $0xc0] sm:$0xff] %vm395_vm0, %v2868_v2  ;;  %421 = vst.msk [vmem:[%s2988_s23 + $0xc8] sm:$0xff] %vm395_vm0, %v2868_v2 }
  0x38   : > { %422 = vst.msk [vmem:[%s2988_s23 + $0xd0] sm:$0xff] %vm395_vm0, %v2868_v2  ;;  %423 = vst.msk [vmem:[%s2988_s23 + $0xd8] sm:$0xff] %vm395_vm0, %v2868_v2 }
  0x39   : > { %424 = vst.msk [vmem:[%s2988_s23 + $0xe0] sm:$0xff] %vm395_vm0, %v2868_v2  ;;  %425 = vst.msk [vmem:[%s2988_s23 + $0xe8] sm:$0xff] %vm395_vm0, %v2868_v2 }
  0x3a   : > { %426 = vst.msk [vmem:[%s2988_s23 + $0xf0] sm:$0xff] %vm395_vm0, %v2868_v2  ;;  %427 = vst.msk [vmem:[%s2988_s23 + $0xf8] sm:$0xff] %vm395_vm0, %v2868_v2 }
  0x3b PF: > { %v548_v3 = vld [vmem:[%s350_s25] sm:$0x3]  ;;  %vm586_vm1 = vcmask 1041408   ;;  %v434_v4 = vld [vmem:[%s3963_s2 + $0x10] sm:$0xff]  ;;  %v2869_v6 = vmov 0   ;;  %vm579_vm2 = vcmask 31744  }
  0x3c   : > { %v432_v5 = vld [vmem:[%s3963_s2] sm:$0xff]  ;;  %2780 = vset.pattern.permute.xlu1 %v2869_v6  ;;  %2779 = vset.pattern.permute.xlu0 %v2869_v6  ;;  %v588_v7 = vsel %vm586_vm1, %v548_v3, 0  ;;  %v3074_v9 = vld [vmem:[%s3962_s1 + $0x8] sm:$0xff]   ;;  %v435_v10 = vld [vmem:[%s3963_s2 + $0x18] sm:$0xff]  ;;  %vm705_vm3 = vcmask 261120   ;;  %vm915_vm4 = vcmask 523264  }
  0x3d   : > { %v3068_v8 = vld [vmem:[%s3962_s1] sm:$0xff]   ;;  %2719 = vmatprep.subr.msk.bf16.mxu0 %vm586_vm1, %v548_v3  ;;  %561 = vperm.xlu1 %2780, %v434_v4   ;;  %v433_v11 = vld [vmem:[%s3963_s2 + $0x8] sm:$0xff]  ;;  %v447_v14 = vld [vmem:[%s3965_s4 + $0x18] sm:$0xff]  ;;  %vm1638_vm5 = vcmask 7168   ;;  %vm2250_vm6 = vcmask 15368  }
  0x3e   : > { %2524 = vmatpush3.bf16.msra.mxu0 %v588_v7  ;;  %551 = vperm.xlu0 %2779, %v432_v5   ;;  %v445_v12 = vld [vmem:[%s3965_s4 + $0x8] sm:$0xff]  ;;  %v444_v13 = vld [vmem:[%s3965_s4] sm:$0xff]  ;;  %v446_v15 = vld [vmem:[%s3965_s4 + $0x10] sm:$0xff] }
  0x3f   : > { %2525 = vmatprep.mubr.msk.bf16.mxu0 %vm579_vm2, %v3068_v8  ;;  %v449_v16 = vld [vmem:[%s3965_s4 + $0x28] sm:$0xff]  ;;  %v448_v17 = vld [vmem:[%s3965_s4 + $0x20] sm:$0xff]  ;;  %v451_v18 = vld [vmem:[%s3965_s4 + $0x38] sm:$0xff] }
  0x40   : > { %v450_v19 = vld [vmem:[%s3965_s4 + $0x30] sm:$0xff]  ;;  %v469_v20 = vld [vmem:[%s3967_s6 + $0x8] sm:$0xff]  ;;  %v468_v21 = vld [vmem:[%s3967_s6] sm:$0xff] }
  0x41   : > { %2526 = vmatmul.mubr.msk.bf16.vlgmr.msra.gmra.mrb[0].mxu0 %vm579_vm2, %v3074_v9  ;;  %566 = vperm.xlu1 %2780, %v435_v10   ;;  %v471_v22 = vld [vmem:[%s3967_s6 + $0x18] sm:$0xff]  ;;  %v470_v23 = vld [vmem:[%s3967_s6 + $0x10] sm:$0xff]  ;;  %v473_v24 = vld [vmem:[%s3967_s6 + $0x28] sm:$0xff] }
  0x42   : > { %556 = vperm.xlu0 %2779, %v433_v11   ;;  %v472_v25 = vld [vmem:[%s3967_s6 + $0x20] sm:$0xff]  ;;  %v475_v26 = vld [vmem:[%s3967_s6 + $0x38] sm:$0xff]  ;;  %v474_v27 = vld [vmem:[%s3967_s6 + $0x30] sm:$0xff] }
  0x43   : > { %v477_v28 = vld [vmem:[%s3967_s6 + $0x48] sm:$0xff]  ;;  %v476_v29 = vld [vmem:[%s3967_s6 + $0x40] sm:$0xff]  ;;  %v479_v30 = vld [vmem:[%s3967_s6 + $0x58] sm:$0xff] }
  0x44   : > { %v478_v31 = vld [vmem:[%s3967_s6 + $0x50] sm:$0xff]  ;;  %v481_v32 = vld [vmem:[%s3967_s6 + $0x68] sm:$0xff]  ;;  %v480_v33 = vld [vmem:[%s3967_s6 + $0x60] sm:$0xff] }
  0x45   : > { %652 = vperm.xlu1 %2780, %v445_v12   ;;  %v483_v34 = vld [vmem:[%s3967_s6 + $0x78] sm:$0xff]  ;;  %v482_v35 = vld [vmem:[%s3967_s6 + $0x70] sm:$0xff]  ;;  %v517_v36 = vld [vmem:[%s3969_s8 + $0x8] sm:$0xff] }
  0x46   : > { %647 = vperm.xlu0 %2779, %v444_v13   ;;  %v516_v37 = vld [vmem:[%s3969_s8] sm:$0xff]  ;;  %v519_v38 = vld [vmem:[%s3969_s8 + $0x18] sm:$0xff]  ;;  %v518_v39 = vld [vmem:[%s3969_s8 + $0x10] sm:$0xff] }
  0x47   : > { %v521_v40 = vld [vmem:[%s3969_s8 + $0x28] sm:$0xff]  ;;  %v520_v41 = vld [vmem:[%s3969_s8 + $0x20] sm:$0xff]  ;;  %v523_v42 = vld [vmem:[%s3969_s8 + $0x38] sm:$0xff] }
  0x48   : > { %v522_v43 = vld [vmem:[%s3969_s8 + $0x30] sm:$0xff]  ;;  %v525_v44 = vld [vmem:[%s3969_s8 + $0x48] sm:$0xff]  ;;  %v524_v45 = vld [vmem:[%s3969_s8 + $0x40] sm:$0xff] }
  0x49   : > { %662 = vperm.xlu1 %2780, %v447_v14   ;;  %v527_v46 = vld [vmem:[%s3969_s8 + $0x58] sm:$0xff]  ;;  %v526_v47 = vld [vmem:[%s3969_s8 + $0x50] sm:$0xff]  ;;  %v529_v48 = vld [vmem:[%s3969_s8 + $0x68] sm:$0xff] }
  0x4a   : > { %657 = vperm.xlu0 %2779, %v446_v15   ;;  %v528_v49 = vld [vmem:[%s3969_s8 + $0x60] sm:$0xff]  ;;  %v531_v50 = vld [vmem:[%s3969_s8 + $0x78] sm:$0xff]  ;;  %v530_v51 = vld [vmem:[%s3969_s8 + $0x70] sm:$0xff] }
  0x4b   : > { %v533_v52 = vld [vmem:[%s3969_s8 + $0x88] sm:$0xff]  ;;  %v532_v53 = vld [vmem:[%s3969_s8 + $0x80] sm:$0xff]  ;;  %v535_v54 = vld [vmem:[%s3969_s8 + $0x98] sm:$0xff] }
  0x4c   : > { %v534_v55 = vld [vmem:[%s3969_s8 + $0x90] sm:$0xff]  ;;  %v537_v56 = vld [vmem:[%s3969_s8 + $0xa8] sm:$0xff]  ;;  %v536_v57 = vld [vmem:[%s3969_s8 + $0xa0] sm:$0xff] }
  0x4d   : > { %672 = vperm.xlu1 %2780, %v449_v16   ;;  %v539_v58 = vld [vmem:[%s3969_s8 + $0xb8] sm:$0xff]  ;;  %v538_v59 = vld [vmem:[%s3969_s8 + $0xb0] sm:$0xff]  ;;  %v541_v60 = vld [vmem:[%s3969_s8 + $0xc8] sm:$0xff] }
  0x4e   : > { %667 = vperm.xlu0 %2779, %v448_v17   ;;  %v540_v61 = vld [vmem:[%s3969_s8 + $0xc0] sm:$0xff]  ;;  %v543_v63 = vld [vmem:[%s3969_s8 + $0xd8] sm:$0xff]  ;;  %v542_v0 = vld [vmem:[%s3969_s8 + $0xd0] sm:$0xff] }
  0x4f   : > { %v3239_v62 = vld [vmem:[%s3964_s3] sm:$0xff]   ;;  %v545_v1 = vld [vmem:[%s3969_s8 + $0xe8] sm:$0xff]  ;;  %v547_v3 = vld [vmem:[%s3969_s8 + $0xf8] sm:$0xff] }
  0x50   : > { %2533 = vmatprep.mubr.msk.bf16.mxu1 %vm705_vm3, %v3239_v62  ;;  %v544_v2 = vld [vmem:[%s3969_s8 + $0xe0] sm:$0xff]  ;;  %v546_v4 = vld [vmem:[%s3969_s8 + $0xf0] sm:$0xff] }
  0x51   : > { %682 = vperm.xlu1 %2780, %v451_v18  }
  0x52   : > { %677 = vperm.xlu0 %2779, %v450_v19  }
  0x55   : > { %802 = vperm.xlu1 %2780, %v469_v20  }
  0x56   : > { %797 = vperm.xlu0 %2779, %v468_v21  }
  0x59   : > { %812 = vperm.xlu1 %2780, %v471_v22  }
  0x5a   : > { %807 = vperm.xlu0 %2779, %v470_v23  }
  0x5d   : > { %822 = vperm.xlu1 %2780, %v473_v24  }
  0x5e   : > { %817 = vperm.xlu0 %2779, %v472_v25   ;;  %v3276_v25 = vld [vmem:[%s3964_s3 + $0x8] sm:$0xff]  }
  0x61   : > { %832 = vperm.xlu1 %2780, %v475_v26   ;;  %v3281_v26 = vld [vmem:[%s3964_s3 + $0x10] sm:$0xff]  }
  0x62   : > { %827 = vperm.xlu0 %2779, %v474_v27   ;;  %v3290_v27 = vld [vmem:[%s3964_s3 + $0x18] sm:$0xff]  }
  0x65   : > { %842 = vperm.xlu1 %2780, %v477_v28   ;;  %v3297_v28 = vld [vmem:[%s3966_s5] sm:$0xff]  }
  0x66   : > { %837 = vperm.xlu0 %2779, %v476_v29   ;;  %2549 = vmatprep.mubr.msk.bf16.mxu0 %vm915_vm4, %v3297_v28 }
  0x69   : > { %852 = vperm.xlu1 %2780, %v479_v30  }
  0x6a   : > { %847 = vperm.xlu0 %2779, %v478_v31  }
  0x6d   : > { %862 = vperm.xlu1 %2780, %v481_v32  }
  0x6e   : > { %857 = vperm.xlu0 %2779, %v480_v33  }
  0x71   : > { %872 = vperm.xlu1 %2780, %v483_v34  }
  0x72   : > { %867 = vperm.xlu0 %2779, %v482_v35  }
  0x75   : > { %1068 = vperm.xlu1 %2780, %v517_v36  }
  0x76   : > { %1063 = vperm.xlu0 %2779, %v516_v37  }
  0x79   : > { %1078 = vperm.xlu1 %2780, %v519_v38  }
  0x7a   : > { %1073 = vperm.xlu0 %2779, %v518_v39  }
  0x7d   : > { %1088 = vperm.xlu1 %2780, %v521_v40  }
  0x7e   : > { %1083 = vperm.xlu0 %2779, %v520_v41  }
  0x81   : > { %1098 = vperm.xlu1 %2780, %v523_v42  }
  0x82   : > { %1093 = vperm.xlu0 %2779, %v522_v43  }
  0x85   : > { %1108 = vperm.xlu1 %2780, %v525_v44  }
  0x86   : > { %1103 = vperm.xlu0 %2779, %v524_v45  }
  0x89   : > { %1118 = vperm.xlu1 %2780, %v527_v46  }
  0x8a   : > { %1113 = vperm.xlu0 %2779, %v526_v47  }
  0x8d   : > { %1128 = vperm.xlu1 %2780, %v529_v48  }
  0x8e   : > { %1123 = vperm.xlu0 %2779, %v528_v49  }
  0x91   : > { %1138 = vperm.xlu1 %2780, %v531_v50  }
  0x92   : > { %1133 = vperm.xlu0 %2779, %v530_v51  }
  0x95   : > { %1148 = vperm.xlu1 %2780, %v533_v52  }
  0x96   : > { %1143 = vperm.xlu0 %2779, %v532_v53  }
  0x99   : > { %1158 = vperm.xlu1 %2780, %v535_v54  }
  0x9a   : > { %1153 = vperm.xlu0 %2779, %v534_v55  }
  0x9d   : > { %1168 = vperm.xlu1 %2780, %v537_v56  }
  0x9e   : > { %1163 = vperm.xlu0 %2779, %v536_v57  }
  0xa1   : > { %1178 = vperm.xlu1 %2780, %v539_v58  }
  0xa2   : > { %1173 = vperm.xlu0 %2779, %v538_v59  }
  0xa5   : > { %1188 = vperm.xlu1 %2780, %v541_v60  }
  0xa6   : > { %1183 = vperm.xlu0 %2779, %v540_v61  }
  0xa9   : > { %1198 = vperm.xlu1 %2780, %v543_v63  }
  0xaa   : > { %1193 = vperm.xlu0 %2779, %v542_v0  }
  0xad   : > { %1208 = vperm.xlu1 %2780, %v545_v1  }
  0xae   : > { %1203 = vperm.xlu0 %2779, %v544_v2   ;;  %v3328_v2 = vld [vmem:[%s3966_s5 + $0x8] sm:$0xff]  }
  0xb1   : > { %1218 = vperm.xlu1 %2780, %v547_v3   ;;  %v3333_v3 = vld [vmem:[%s3966_s5 + $0x10] sm:$0xff]  }
  0xb2   : > { %1213 = vperm.xlu0 %2779, %v546_v4   ;;  %v3342_v4 = vld [vmem:[%s3966_s5 + $0x18] sm:$0xff]  }
  0xbc   : > { %v3261_v5 = vpop.permute.xlu1 %561 }
  0xbd   : > { %v3263_v6 = vpop.permute.xlu0 %551 }
  0xc0   : > { %v3266_v12 = vpop.permute.xlu1 %566 }
  0xc1   : > { %v3269_v15 = vpop.permute.xlu0 %556 }
  0xc4   : > { %v3303_v30 = vpop.permute.xlu1 %652 }
  0xc5   : > { %v3301_v29 = vpop.permute.xlu0 %647 }
  0xc8   : > { %v3307_v32 = vpop.permute.xlu1 %662 }
  0xc9   : > { %v3305_v31 = vpop.permute.xlu0 %657 }
  0xcc   : > { %v3314_v41 = vpop.permute.xlu1 %672 }
  0xcd   : > { %v3310_v36 = vpop.permute.xlu0 %667 }
  0xd0   : > { %v3320_v53 = vpop.permute.xlu1 %682 }
  0xd1   : > { %v3317_v48 = vpop.permute.xlu0 %677 }
 0x114   : > { %v2527_v7 = vpop.f32.mrb[0].mxu0 }
 0x115   : > { %v633_v10 = vadd.f32 %v2527_v7, %v3261_v5  ;;  %v624_v11 = vpop.f32.mrb[1].mxu0  ;;  %v3347_v7 = vld [vmem:[%s3966_s5 + $0x20] sm:$0xff]  }
 0x116   : > { %v625_v13 = vadd.f32 %v624_v11, %v3263_v6  ;;  %v2528_v14 = vpop.f32.mrb[2].mxu0  ;;  %v3361_v11 = vld [vmem:[%s3966_s5 + $0x30] sm:$0xff]  }
 0x117   : > { %v636_v16 = vadd.f32 %v2528_v14, %v3266_v12  ;;  %v627_v17 = vpop.f32.mrb[3].mxu0  ;;  %v641_v19 = vmax.f32 %v633_v10, 0.0  ;;  %v3356_v10 = vld [vmem:[%s3966_s5 + $0x28] sm:$0xff]   ;;  %v3377_v14 = vld [vmem:[%s3968_s7] sm:$0xff]  }
 0x118   : > { %v628_v18 = vadd.f32 %v627_v17, %v3269_v15  ;;  %v639_v21 = vmax.f32 %v625_v13, 0.0  ;;  %v3370_v13 = vld [vmem:[%s3966_s5 + $0x38] sm:$0xff]   ;;  %v3383_v17 = vpop.permute.xlu0 %797 }
 0x119   : > { %v642_v20 = vmax.f32 %v636_v16, 0.0  ;;  %v2796_v16 = vld [vmem:[%s3968_s7 + $0x40] sm:$0xff]   ;;  %4021 = vst [vmem:[#allocation4_spill] sm:$0xff] %v3383_v17 }
 0x11a   : > { %v640_v22 = vmax.f32 %v628_v18, 0.0  ;;  %v3385_v18 = vpop.permute.xlu1 %802 }
 0x11b   : > { %v644_v23 = vpack.c.bf16 %v642_v20, %v641_v19  ;;  %4022 = vst [vmem:[#allocation5_spill] sm:$0xff] %v3385_v18 }
 0x11c   : > { %v643_v24 = vpack.c.bf16 %v640_v22, %v639_v21  ;;  %v3387_v19 = vpop.permute.xlu0 %807 }
 0x11d   : > { %4023 = vst [vmem:[#allocation6_spill] sm:$0xff] %v3387_v19 }
 0x11e   : > { %2529 = vmatprep.subr.bf16.mxu1 %v643_v24  ;;  %v3389_v20 = vpop.permute.xlu1 %812 }
 0x11f   : > { %2530 = vmatpush3.bf16.msra.mxu1 %v643_v24  ;;  %4024 = vst [vmem:[#allocation7_spill] sm:$0xff] %v3389_v20 }
 0x120   : > { %2531 = vmatprep.subr.bf16.mxu1 %v644_v23  ;;  %v3391_v21 = vpop.permute.xlu0 %817 }
 0x121   : > { %4025 = vst [vmem:[#allocation8_spill] sm:$0xff] %v3391_v21 }
 0x122   : > { %v3393_v22 = vpop.permute.xlu1 %822 }
 0x123   : > { %2532 = vmatpush3.bf16.msra.mxu1 %v644_v23  ;;  %4026 = vst [vmem:[#allocation9_spill] sm:$0xff] %v3393_v22 }
 0x124   : > { %v3395_v23 = vpop.permute.xlu0 %827 }
 0x125   : > { %4027 = vst [vmem:[#allocation10_spill] sm:$0xff] %v3395_v23 }
 0x126   : > { %2534 = vmatmul.mubr.msk.bf16.vlgmr.msra.gmra.mrb[0].mxu1 %vm705_vm3, %v3276_v25 }
 0x127   : > { %2537 = vmatprep.mubr.msk.bf16.mxu1 %vm705_vm3, %v3281_v26 }
 0x12e   : > { %2538 = vmatmul.mubr.msk.bf16.gmra.mrb[4].mxu1 %vm705_vm3, %v3290_v27 }
 0x12f   : > { %2597 = vmatprep.mubr.bf16.mxu1 %v2796_v16 }
 0x1f9   : > { %v2535_v33 = vpop.f32.mrb[0].mxu1 }
 0x1fa   : > { %v761_v34 = vadd.f32 %v2535_v33, %v3305_v31  ;;  %v752_v35 = vpop.f32.mrb[1].mxu1 }
 0x1fb   : > { %v753_v37 = vadd.f32 %v752_v35, %v3301_v29  ;;  %v2536_v38 = vpop.f32.mrb[2].mxu1  ;;  %v3398_v35 = vpop.permute.xlu1 %832 }
 0x1fc   : > { %v764_v39 = vadd.f32 %v2536_v38, %v3307_v32  ;;  %v755_v40 = vpop.f32.mrb[3].mxu1  ;;  %v785_v43 = vmax.f32 %v761_v34, 0.0  ;;  %4028 = vst [vmem:[#allocation11_spill] sm:$0xff] %v3398_v35 }
 0x1fd   : > { %v756_v42 = vadd.f32 %v755_v40, %v3303_v30  ;;  %v783_v45 = vmax.f32 %v753_v37, 0.0 }
 0x1fe   : > { %v786_v44 = vmax.f32 %v764_v39, 0.0 }
 0x1ff   : > { %v784_v46 = vmax.f32 %v756_v42, 0.0 }
 0x200   : > { %v792_v47 = vpack.c.bf16 %v786_v44, %v785_v43 }
 0x201   : > { %v791_v49 = vpack.c.bf16 %v784_v46, %v783_v45  ;;  %v2539_v50 = vpop.f32.mrb[4].mxu1  ;;  %v3403_v45 = vpop.permute.xlu0 %837 }
 0x202   : > { %v777_v51 = vadd.f32 %v2539_v50, %v3317_v48  ;;  %v768_v52 = vpop.f32.mrb[5].mxu1  ;;  %4029 = vst [vmem:[#allocation12_spill] sm:$0xff] %v3403_v45  ;;  %v3405_v50 = vpop.permute.xlu1 %842 }
 0x203   : > { %v769_v54 = vadd.f32 %v768_v52, %v3310_v36  ;;  %v2540_v55 = vpop.f32.mrb[6].mxu1  ;;  %2541 = vmatprep.subr.bf16.mxu0 %v791_v49  ;;  %4030 = vst [vmem:[#allocation13_spill] sm:$0xff] %v3405_v50 }
 0x204   : > { %v780_v56 = vadd.f32 %v2540_v55, %v3320_v53  ;;  %v771_v57 = vpop.f32.mrb[7].mxu1  ;;  %2542 = vmatpush3.bf16.msra.mxu0 %v791_v49  ;;  %v789_v59 = vmax.f32 %v777_v51, 0.0 }
 0x205   : > { %v772_v58 = vadd.f32 %v771_v57, %v3314_v41  ;;  %2543 = vmatprep.subr.bf16.mxu0 %v792_v47  ;;  %v787_v61 = vmax.f32 %v769_v54, 0.0 }
 0x206   : > { %v790_v60 = vmax.f32 %v780_v56, 0.0 }
 0x207   : > { %v788_v63 = vmax.f32 %v772_v58, 0.0 }
 0x208   : > { %v794_v0 = vpack.c.bf16 %v790_v60, %v789_v59  ;;  %2544 = vmatpush3.bf16.msra.mxu0 %v792_v47  ;;  %v3410_v60 = vpop.permute.xlu0 %847 }
 0x209   : > { %v793_v1 = vpack.c.bf16 %v788_v63, %v787_v61  ;;  %4031 = vst [vmem:[#allocation14_spill] sm:$0xff] %v3410_v60 }
 0x20b   : > { %2545 = vmatprep.subr.bf16.mxu0 %v793_v1 }
 0x20c   : > { %2546 = vmatpush3.bf16.msra.mxu0 %v793_v1  ;;  %v3413_v1 = vpop.permute.xlu1 %852 }
 0x20d   : > { %2547 = vmatprep.subr.bf16.mxu0 %v794_v0  ;;  %4032 = vst [vmem:[#allocation15_spill] sm:$0xff] %v3413_v1 }
 0x210   : > { %2548 = vmatpush3.bf16.msra.mxu0 %v794_v0 }
 0x213   : > { %2550 = vmatmul.mubr.msk.bf16.vlgmr.msra.gmra.mrb[4].mxu0 %vm915_vm4, %v3328_v2 }
 0x214   : > { %2553 = vmatprep.mubr.msk.bf16.mxu0 %vm915_vm4, %v3333_v3 }
 0x21b   : > { %2554 = vmatmul.mubr.msk.bf16.gmra.mrb[8].mxu0 %vm915_vm4, %v3342_v4 }
 0x21c   : > { %2557 = vmatprep.mubr.msk.bf16.mxu0 %vm915_vm4, %v3347_v7 }
 0x223   : > { %2558 = vmatmul.mubr.msk.bf16.gmra.mrb[12].mxu0 %vm915_vm4, %v3356_v10 }
 0x224   : > { %2561 = vmatprep.mubr.msk.bf16.mxu0 %vm915_vm4, %v3361_v11 }
 0x22b   : > { %2562 = vmatmul.mubr.msk.bf16.gmra.mrb[16].mxu0 %vm915_vm4, %v3370_v13 }
 0x22c   : > { %2581 = vmatprep.mubr.bf16.mxu0 %v3377_v14 }
 0x2e6   : > { %v2551_v24 = vpop.f32.mrb[4].mxu0 }
 0x2e7   : > { %v983_v33 = vadd.f32 %v2551_v24, %v3387_v19  ;;  %v974_v34 = vpop.f32.mrb[5].mxu0 }
 0x2e8   : > { %v975_v37 = vadd.f32 %v974_v34, %v3383_v17  ;;  %v2552_v38 = vpop.f32.mrb[6].mxu0 }
 0x2e9   : > { %v986_v39 = vadd.f32 %v2552_v38, %v3389_v20  ;;  %v977_v40 = vpop.f32.mrb[7].mxu0  ;;  %v1039_v43 = vmax.f32 %v983_v33, 0.0 }
 0x2ea   : > { %v978_v42 = vadd.f32 %v977_v40, %v3385_v18  ;;  %v1037_v46 = vmax.f32 %v975_v37, 0.0  ;;  %v3416_v40 = vpop.permute.xlu0 %857 }
 0x2eb   : > { %v1040_v44 = vmax.f32 %v986_v39, 0.0  ;;  %4033 = vst [vmem:[#allocation16_spill] sm:$0xff] %v3416_v40 }
 0x2ec   : > { %v1038_v47 = vmax.f32 %v978_v42, 0.0 }
 0x2ed   : > { %v1054_v49 = vpack.c.bf16 %v1040_v44, %v1039_v43 }
 0x2ee   : > { %v1053_v51 = vpack.c.bf16 %v1038_v47, %v1037_v46  ;;  %v2555_v52 = vpop.f32.mrb[8].mxu0  ;;  %v3420_v47 = vpop.permute.xlu1 %862 }
 0x2ef   : > { %v999_v54 = vadd.f32 %v2555_v52, %v3395_v23  ;;  %v990_v55 = vpop.f32.mrb[9].mxu0  ;;  %4034 = vst [vmem:[#allocation17_spill] sm:$0xff] %v3420_v47 }
 0x2f0   : > { %v991_v56 = vadd.f32 %v990_v55, %v3391_v21  ;;  %v2556_v57 = vpop.f32.mrb[10].mxu0  ;;  %2565 = vmatprep.subr.bf16.mxu0 %v1053_v51  ;;  %2703 = vmatprep.subr.bf16.mxu1 %v1053_v51 }
 0x2f1   : > { %v1002_v58 = vadd.f32 %v2556_v57, %v3398_v35  ;;  %v993_v59 = vpop.f32.mrb[11].mxu0  ;;  %2566 = vmatpush3.bf16.msra.mxu0 %v1053_v51  ;;  %2711 = vmatpush3.bf16.msra.mxu1 %v1053_v51  ;;  %v1043_v63 = vmax.f32 %v999_v54, 0.0  ;;  %v3423_v57 = vpop.permute.xlu0 %867 }
 0x2f2   : > { %v994_v61 = vadd.f32 %v993_v59, %v3393_v22  ;;  %2567 = vmatprep.subr.bf16.mxu0 %v1054_v49  ;;  %2704 = vmatprep.subr.bf16.mxu1 %v1054_v49  ;;  %v1041_v16 = vmax.f32 %v991_v56, 0.0  ;;  %4035 = vst [vmem:[#allocation18_spill] sm:$0xff] %v3423_v57 }
 0x2f3   : > { %v1044_v0 = vmax.f32 %v1002_v58, 0.0 }
 0x2f4   : > { %v1042_v24 = vmax.f32 %v994_v61, 0.0 }
 0x2f5   : > { %v1056_v33 = vpack.c.bf16 %v1044_v0, %v1043_v63  ;;  %2568 = vmatpush3.bf16.msra.mxu0 %v1054_v49  ;;  %2712 = vmatpush3.bf16.msra.mxu1 %v1054_v49  ;;  %v3426_v0 = vpop.permute.xlu1 %872 }
 0x2f6   : > { %v1055_v34 = vpack.c.bf16 %v1042_v24, %v1041_v16  ;;  %v2559_v37 = vpop.f32.mrb[12].mxu0  ;;  %4036 = vst [vmem:[#allocation19_spill] sm:$0xff] %v3426_v0 }
 0x2f7   : > { %v1015_v38 = vadd.f32 %v2559_v37, %v3410_v60  ;;  %v1006_v39 = vpop.f32.mrb[13].mxu0 }
 0x2f8   : > { %v1007_v42 = vadd.f32 %v1006_v39, %v3403_v45  ;;  %v2560_v43 = vpop.f32.mrb[14].mxu0  ;;  %2569 = vmatprep.subr.bf16.mxu0 %v1055_v34  ;;  %2705 = vmatprep.subr.bf16.mxu1 %v1055_v34 }
 0x2f9   : > { %v1018_v44 = vadd.f32 %v2560_v43, %v3413_v1  ;;  %v1009_v46 = vpop.f32.mrb[15].mxu0  ;;  %2570 = vmatpush3.bf16.msra.mxu0 %v1055_v34  ;;  %2713 = vmatpush3.bf16.msra.mxu1 %v1055_v34  ;;  %v1047_v51 = vmax.f32 %v1015_v38, 0.0 }
 0x2fa   : > { %v1010_v49 = vadd.f32 %v1009_v46, %v3405_v50  ;;  %2571 = vmatprep.subr.bf16.mxu0 %v1056_v33  ;;  %2706 = vmatprep.subr.bf16.mxu1 %v1056_v33  ;;  %v1045_v54 = vmax.f32 %v1007_v42, 0.0 }
 0x2fb   : > { %v1048_v52 = vmax.f32 %v1018_v44, 0.0 }
 0x2fc   : > { %v1046_v55 = vmax.f32 %v1010_v49, 0.0  ;;  %v2415_v49 = vld [vmem:[%s350_s25 + $0x2] sm:$0x3] }
 0x2fd   : > { %v1058_v56 = vpack.c.bf16 %v1048_v52, %v1047_v51  ;;  %2572 = vmatpush3.bf16.msra.mxu0 %v1056_v33  ;;  %2714 = vmatpush3.bf16.msra.mxu1 %v1056_v33  ;;  %v3436_v51 = vld [vmem:[%s3968_s7 + $0x8] sm:$0xff]  }
 0x2fe   : > { %v1057_v58 = vpack.c.bf16 %v1046_v55, %v1045_v54  ;;  %v2563_v59 = vpop.f32.mrb[16].mxu0  ;;  %4037 = vst [vmem:[#allocation20_spill] sm:$0xff] %v3436_v51  ;;  %v3441_v52 = vld [vmem:[%s3968_s7 + $0x48] sm:$0xff]   ;;  %v3446_v54 = vld [vmem:[%s3968_s7 + $0x10] sm:$0xff]   ;;  %v1674_v55 = vsel %vm586_vm1, %v2415_v49, 0 }
 0x2ff   : > { %v1031_v61 = vadd.f32 %v2563_v59, %v3423_v57  ;;  %v1022_v63 = vpop.f32.mrb[17].mxu0  ;;  %4038 = vst [vmem:[#allocation21_spill] sm:$0xff] %v3441_v52  ;;  %4039 = vst [vmem:[#allocation22_spill] sm:$0xff] %v3446_v54  ;;  %v3467_v59 = vld [vmem:[%s3968_s7 + $0x58] sm:$0xff]  }
 0x300   : > { %v1023_v16 = vadd.f32 %v1022_v63, %v3416_v40  ;;  %v2564_v24 = vpop.f32.mrb[18].mxu0  ;;  %2573 = vmatprep.subr.bf16.mxu0 %v1057_v58  ;;  %2707 = vmatprep.subr.bf16.mxu1 %v1057_v58  ;;  %4042 = vst [vmem:[#allocation25_spill] sm:$0xff] %v3467_v59  ;;  %v3477_v63 = vld [vmem:[%s3968_s7 + $0x60] sm:$0xff]  }
 0x301   : > { %v1034_v34 = vadd.f32 %v2564_v24, %v3426_v0  ;;  %v1025_v37 = vpop.f32.mrb[19].mxu0  ;;  %2574 = vmatpush3.bf16.msra.mxu0 %v1057_v58  ;;  %2715 = vmatpush3.bf16.msra.mxu1 %v1057_v58  ;;  %v1051_v38 = vmax.f32 %v1031_v61, 0.0  ;;  %v3462_v58 = vld [vmem:[%s3968_s7 + $0x18] sm:$0xff]   ;;  %v3472_v61 = vld [vmem:[%s3968_s7 + $0x20] sm:$0xff]   ;;  %4044 = vst [vmem:[#allocation27_spill] sm:$0xff] %v3477_v63  ;;  %v3491_v24 = vld [vmem:[%s3968_s7 + $0x68] sm:$0xff]  }
 0x302   : > { %v1026_v33 = vadd.f32 %v1025_v37, %v3420_v47  ;;  %2575 = vmatprep.subr.bf16.mxu0 %v1058_v56  ;;  %2708 = vmatprep.subr.bf16.mxu1 %v1058_v56  ;;  %v1049_v42 = vmax.f32 %v1023_v16, 0.0  ;;  %4041 = vst [vmem:[#allocation24_spill] sm:$0xff] %v3462_v58  ;;  %4043 = vst [vmem:[#allocation26_spill] sm:$0xff] %v3472_v61  ;;  %v3486_v16 = vld [vmem:[%s3968_s7 + $0x28] sm:$0xff]   ;;  %v3501_v37 = vld [vmem:[%s3968_s7 + $0x70] sm:$0xff]  }
 0x303   : > { %v1052_v39 = vmax.f32 %v1034_v34, 0.0  ;;  %4045 = vst [vmem:[#allocation28_spill] sm:$0xff] %v3486_v16  ;;  %4046 = vst [vmem:[#allocation29_spill] sm:$0xff] %v3491_v24  ;;  %v3496_v34 = vld [vmem:[%s3968_s7 + $0x30] sm:$0xff]  }
 0x304   : > { %v1050_v43 = vmax.f32 %v1026_v33, 0.0  ;;  %4047 = vst [vmem:[#allocation30_spill] sm:$0xff] %v3496_v34  ;;  %4048 = vst [vmem:[#allocation31_spill] sm:$0xff] %v3501_v37  ;;  %v3510_v33 = vld [vmem:[%s3968_s7 + $0x38] sm:$0xff]  }
 0x305   : > { %v1060_v44 = vpack.c.bf16 %v1052_v39, %v1051_v38  ;;  %2576 = vmatpush3.bf16.msra.mxu0 %v1058_v56  ;;  %2716 = vmatpush3.bf16.msra.mxu1 %v1058_v56  ;;  %v3453_v56 = vld [vmem:[%s3968_s7 + $0x50] sm:$0xff]   ;;  %4049 = vst [vmem:[#allocation32_spill] sm:$0xff] %v3510_v33  ;;  %v3515_v38 = vld [vmem:[%s3968_s7 + $0x78] sm:$0xff]   ;;  %v3526_v39 = vpop.permute.xlu0 %1063 }
 0x306   : > { %v1059_v46 = vpack.c.bf16 %v1050_v43, %v1049_v42  ;;  %4040 = vst [vmem:[#allocation23_spill] sm:$0xff] %v3453_v56  ;;  %4050 = vst [vmem:[#allocation33_spill] sm:$0xff] %v3515_v38  ;;  %v3528_v42 = vpop.permute.xlu1 %1068 }
 0x307   : > { %4051 = vst [vmem:[#allocation34_spill] sm:$0xff] %v3526_v39  ;;  %4052 = vst [vmem:[#allocation35_spill] sm:$0xff] %v3528_v42 }
 0x308   : > { %2577 = vmatprep.subr.bf16.mxu0 %v1059_v46  ;;  %2709 = vmatprep.subr.bf16.mxu1 %v1059_v46 }
 0x309   : > { %2578 = vmatpush3.bf16.msra.mxu0 %v1059_v46  ;;  %2717 = vmatpush3.bf16.msra.mxu1 %v1059_v46  ;;  %v3530_v43 = vpop.permute.xlu0 %1073 }
 0x30a   : > { %2579 = vmatprep.subr.bf16.mxu0 %v1060_v44  ;;  %2710 = vmatprep.subr.bf16.mxu1 %v1060_v44  ;;  %4053 = vst [vmem:[#allocation36_spill] sm:$0xff] %v3530_v43 }
 0x30d   : > { %2580 = vmatpush3.bf16.msra.mxu0 %v1060_v44  ;;  %2718 = vmatpush3.bf16.msra.mxu1 %v1060_v44  ;;  %v3532_v44 = vpop.permute.xlu1 %1078  ;;  %v3534_v46 = vpop.permute.xlu0 %1083 }
 0x30e   : > { %2720 = vmatprep.subr.msk.bf16.mxu0 %vm586_vm1, %v2415_v49  ;;  %4054 = vst [vmem:[#allocation37_spill] sm:$0xff] %v3532_v44  ;;  %4055 = vst [vmem:[#allocation38_spill] sm:$0xff] %v3534_v46 }
 0x310   : > { %2582 = vmatmul.mubr.bf16.vlgmr.msra.gmra.mrb[20].mxu0 %v3436_v51  ;;  %2598 = vmatmul.mubr.bf16.vlgmr.msra.gmra.mrb[8].mxu1 %v3441_v52 }
 0x311   : > { %2614 = vmatpush3.bf16.msra.mxu0 %v1674_v55  ;;  %2585 = vmatprep.mubr.bf16.mxu0 %v3446_v54  ;;  %v3536_v49 = vpop.permute.xlu1 %1088 }
 0x312   : > { %2601 = vmatprep.mubr.bf16.mxu1 %v3453_v56  ;;  %4056 = vst [vmem:[#allocation39_spill] sm:$0xff] %v3536_v49 }
 0x318   : > { %2586 = vmatmul.mubr.bf16.gmra.mrb[24].mxu0 %v3462_v58  ;;  %2602 = vmatmul.mubr.bf16.gmra.mrb[12].mxu1 %v3467_v59 }
 0x319   : > { %2589 = vmatprep.mubr.bf16.mxu0 %v3472_v61  ;;  %2605 = vmatprep.mubr.bf16.mxu1 %v3477_v63 }
 0x320   : > { %2590 = vmatmul.mubr.bf16.gmra.mrb[28].mxu0 %v3486_v16  ;;  %2606 = vmatmul.mubr.bf16.gmra.mrb[16].mxu1 %v3491_v24 }
 0x321   : > { %2593 = vmatprep.mubr.bf16.mxu0 %v3496_v34  ;;  %2609 = vmatprep.mubr.bf16.mxu1 %v3501_v37 }
 0x328   : > { %2594 = vmatmul.mubr.bf16.gmra.mrb[32].mxu0 %v3510_v33  ;;  %2610 = vmatmul.mubr.bf16.gmra.mrb[20].mxu1 %v3515_v38 }
 0x329   : > { %2615 = vmatprep.mubr.msk.bf16.mxu0 %vm579_vm2, %v3068_v8  ;;  %2671 = vmatprep.mubr.bf16.mxu1 %v3377_v14  ;;  %v3538_v8 = vpop.permute.xlu0 %1093  ;;  %v3540_v14 = vpop.permute.xlu1 %1098 }
 0x32a   : > { %4057 = vst [vmem:[#allocation40_spill] sm:$0xff] %v3538_v8  ;;  %4058 = vst [vmem:[#allocation41_spill] sm:$0xff] %v3540_v14 }
 0x32d   : > { %v3544_v55 = vpop.permute.xlu1 %1108 }
 0x330   : > { %2616 = vmatmul.mubr.msk.bf16.vlgmr.msra.gmra.mrb[36].mxu0 %vm579_vm2, %v3074_v9  ;;  %v3542_v9 = vpop.permute.xlu0 %1103 }
 0x331   : > { %2623 = vmatprep.mubr.msk.bf16.mxu0 %vm705_vm3, %v3239_v62  ;;  %v3548_v38 = vpop.permute.xlu1 %1118 }
 0x334   : > { %v3546_v62 = vpop.permute.xlu0 %1113 }
 0x335   : > { %4059 = vst [vmem:[#allocation42_spill] sm:$0xff] %v3546_v62  ;;  %v3552_v24 = vpop.permute.xlu1 %1128 }
 0x338   : > { %v3550_v37 = vpop.permute.xlu0 %1123 }
 0x339   : > { %v3556_v59 = vpop.permute.xlu1 %1138 }
 0x33c   : > { %v3554_v63 = vpop.permute.xlu0 %1133 }
 0x33d   : > { %v3560_v52 = vpop.permute.xlu1 %1148 }
 0x33e   : > { %4061 = vst [vmem:[#allocation44_spill] sm:$0xff] %v3560_v52 }
 0x340   : > { %v3558_v56 = vpop.permute.xlu0 %1143 }
 0x341   : > { %4060 = vst [vmem:[#allocation43_spill] sm:$0xff] %v3558_v56  ;;  %v3568_v22 = vpop.permute.xlu1 %1158 }
 0x342   : > { %4063 = vst [vmem:[#allocation46_spill] sm:$0xff] %v3568_v22 }
 0x344   : > { %v3562_v33 = vpop.permute.xlu0 %1153 }
 0x345   : > { %4062 = vst [vmem:[#allocation45_spill] sm:$0xff] %v3562_v33 }
 0x348   : > { %v3570_v35 = vpop.permute.xlu0 %1163 }
 0x349   : > { %4064 = vst [vmem:[#allocation47_spill] sm:$0xff] %v3570_v35 }
 0x3e3   : > { %v2583_v34 = vpop.f32.mrb[20].mxu0  ;;  %v2599_v16 = vpop.f32.mrb[8].mxu1 }
 0x3e4   : > { %v1360_v61 = vadd.f32 %v2583_v34, %v3530_v43  ;;  %v1424_v58 = vadd.f32 %v2599_v16, %v3562_v33  ;;  %v1351_v54 = vpop.f32.mrb[21].mxu0  ;;  %v1415_v51 = vpop.f32.mrb[9].mxu1 }
 0x3e5   : > { %v2584_v47 = vpop.f32.mrb[22].mxu0  ;;  %v2600_v0 = vpop.f32.mrb[10].mxu1  ;;  %v1352_v50 = vadd.f32 %v1351_v54, %v3526_v39  ;;  %v1416_v1 = vadd.f32 %v1415_v51, %v3558_v56 }
 0x3e6   : > { %v1480_v40 = vmax.f32 %v1360_v61, 0.0  ;;  %v1496_v57 = vmax.f32 %v1424_v58, 0.0  ;;  %v1354_v45 = vpop.f32.mrb[23].mxu0  ;;  %v1418_v60 = vpop.f32.mrb[11].mxu1  ;;  %v1363_v33 = vadd.f32 %v2584_v47, %v3532_v44 }
 0x3e7   : > { %v1478_v34 = vmax.f32 %v1352_v50, 0.0  ;;  %v1494_v16 = vmax.f32 %v1416_v1, 0.0  ;;  %v1355_v43 = vadd.f32 %v1354_v45, %v3528_v42  ;;  %v3576_v47 = vpop.permute.xlu0 %1173  ;;  %v3578_v45 = vpop.permute.xlu1 %1168 }
 0x3e8   : > { %1546 = vadd.xlane.f32.xlu1 %v1496_v57  ;;  %1514 = vadd.xlane.f32.xlu0 %v1480_v40  ;;  %v1481_v57 = vmax.f32 %v1363_v33, 0.0  ;;  %v1427_v40 = vadd.f32 %v2600_v0, %v3568_v22  ;;  %4065 = vst [vmem:[#allocation48_spill] sm:$0xff] %v3576_v47  ;;  %4066 = vst [vmem:[#allocation49_spill] sm:$0xff] %v3578_v45 }
 0x3e9   : > { %v1479_v39 = vmax.f32 %v1355_v43, 0.0 }
 0x3ea   : > { %v1497_v42 = vmax.f32 %v1427_v40, 0.0 }
 0x3eb   : > { %v2587_v61 = vpop.f32.mrb[24].mxu0  ;;  %v2603_v58 = vpop.f32.mrb[12].mxu1 }
 0x3ec   : > { %v1431_v21 = vpop.f32.mrb[13].mxu1  ;;  %1542 = vadd.xlane.f32.xlu1 %v1494_v16  ;;  %v1367_v54 = vpop.f32.mrb[25].mxu0  ;;  %1510 = vadd.xlane.f32.xlu0 %v1478_v34  ;;  %v1376_v23 = vadd.f32 %v2587_v61, %v3538_v8  ;;  %v1419_v16 = vadd.f32 %v1418_v60, %v3560_v52  ;;  %v1440_v44 = vadd.f32 %v2603_v58, %v3576_v47 }
 0x3ed   : > { %v2588_v51 = vpop.f32.mrb[26].mxu0  ;;  %v2604_v56 = vpop.f32.mrb[14].mxu1  ;;  %v1368_v8 = vadd.f32 %v1367_v54, %v3534_v46 }
 0x3ee   : > { %v1370_v50 = vpop.f32.mrb[27].mxu0  ;;  %v1434_v1 = vpop.f32.mrb[15].mxu1  ;;  %v1484_v34 = vmax.f32 %v1376_v23, 0.0  ;;  %v1379_v20 = vadd.f32 %v2588_v51, %v3540_v14 }
 0x3ef   : > { %v3588_v23 = vpop.permute.xlu1 %1178  ;;  %v3590_v58 = vpop.permute.xlu0 %1183 }
 0x3f0   : > { %1512 = vadd.xlane.f32.xlu1 %v1479_v39  ;;  %1516 = vadd.xlane.f32.xlu0 %v1481_v57  ;;  %v1495_v39 = vmax.f32 %v1419_v16, 0.0  ;;  %v1500_v57 = vmax.f32 %v1440_v44, 0.0  ;;  %4067 = vst [vmem:[#allocation50_spill] sm:$0xff] %v3588_v23  ;;  %v1485_v47 = vmax.f32 %v1379_v20, 0.0  ;;  %v1443_v44 = vadd.f32 %v2604_v56, %v3588_v23 }
 0x3f2   : > { %v1501_v46 = vmax.f32 %v1443_v44, 0.0 }
 0x3f3   : > { %v2591_v33 = vpop.f32.mrb[28].mxu0  ;;  %v2607_v18 = vpop.f32.mrb[16].mxu1 }
 0x3f4   : > { %v1383_v0 = vpop.f32.mrb[29].mxu0  ;;  %v1447_v43 = vpop.f32.mrb[17].mxu1  ;;  %1522 = vadd.xlane.f32.xlu1 %v1484_v34  ;;  %1548 = vadd.xlane.f32.xlu0 %v1497_v42  ;;  %v1432_v42 = vadd.f32 %v1431_v21, %v3570_v35  ;;  %v1482_v34 = vmax.f32 %v1368_v8, 0.0  ;;  %v1371_v21 = vadd.f32 %v1370_v50, %v3536_v49  ;;  %v1392_v20 = vadd.f32 %v2591_v33, %v3546_v62 }
 0x3f5   : > { %v2592_v61 = vpop.f32.mrb[30].mxu0  ;;  %v2608_v22 = vpop.f32.mrb[18].mxu1  ;;  %v1384_v19 = vadd.f32 %v1383_v0, %v3542_v9 }
 0x3f6   : > { %v3584_v40 = vpop.f32.mrb[31].mxu0  ;;  %v3586_v60 = vpop.f32.mrb[19].mxu1  ;;  %v1498_v14 = vmax.f32 %v1432_v42, 0.0  ;;  %v1488_v35 = vmax.f32 %v1392_v20, 0.0 }
 0x3f7   : > { %v3610_v23 = vpop.permute.xlu0 %1193  ;;  %v3614_v42 = vpop.permute.xlu1 %1188 }
 0x3f8   : > { %1554 = vadd.xlane.f32.xlu1 %v1500_v57  ;;  %1544 = vadd.xlane.f32.xlu0 %v1495_v39  ;;  %4068 = vst [vmem:[#allocation51_spill] sm:$0xff] %v3610_v23  ;;  %v1456_v17 = vadd.f32 %v2607_v18, %v3610_v23 }
 0x3fa   : > { %v1504_v49 = vmax.f32 %v1456_v17, 0.0  ;;  %v1486_v17 = vmax.f32 %v1384_v19, 0.0 }
 0x3fb   : > { %v2595_v16 = vpop.f32.mrb[32].mxu0  ;;  %v3594_v54 = vpop.f32.mrb[20].mxu1 }
 0x3fc   : > { %v3596_v51 = vpop.f32.mrb[33].mxu0  ;;  %v3598_v52 = vpop.f32.mrb[21].mxu1  ;;  %1518 = vadd.xlane.f32.xlu1 %v1482_v34  ;;  %1524 = vadd.xlane.f32.xlu0 %v1485_v47  ;;  %v1435_v47 = vadd.f32 %v1434_v1, %v3578_v45  ;;  %v1483_v34 = vmax.f32 %v1371_v21, 0.0  ;;  %v1395_v1 = vadd.f32 %v2592_v61, %v3548_v38 }
 0x3fd   : > { %v3600_v39 = vpop.f32.mrb[34].mxu0  ;;  %v3602_v57 = vpop.f32.mrb[22].mxu1 }
 0x3fe   : > { %v3606_v56 = vpop.f32.mrb[35].mxu0  ;;  %v3608_v8 = vpop.f32.mrb[23].mxu1  ;;  %v1499_v62 = vmax.f32 %v1435_v47, 0.0 }
 0x400   : > { %1550 = vadd.xlane.f32.xlu1 %v1498_v14  ;;  %1556 = vadd.xlane.f32.xlu0 %v1501_v46 }
 0x403   : > { %v2617_v44 = vpop.f32.mrb[36].mxu0 }
 0x404   : > { %v1719_v50 = vadd.f32 %v2617_v44, %v3261_v5  ;;  %v1710_v33 = vpop.f32.mrb[37].mxu0  ;;  %1530 = vadd.xlane.f32.xlu1 %v1488_v35  ;;  %1520 = vadd.xlane.f32.xlu0 %v1483_v34  ;;  %v3622_v5 = vpop.permute.xlu1 %1198  ;;  %v1448_v35 = vadd.f32 %v1447_v43, %v3590_v58  ;;  %v1489_v34 = vmax.f32 %v1395_v1, 0.0  ;;  %v1408_v43 = vadd.f32 %v2595_v16, %v3554_v63 }
 0x405   : > { %v1711_v14 = vadd.f32 %v1710_v33, %v3263_v6  ;;  %v2618_v46 = vpop.f32.mrb[38].mxu0  ;;  %v1459_v0 = vadd.f32 %v2608_v22, %v3622_v5  ;;  %v3626_v44 = vpop.permute.xlu0 %1203 }
 0x406   : > { %v1722_v21 = vadd.f32 %v2618_v46, %v3266_v12  ;;  %v1713_v18 = vpop.f32.mrb[39].mxu0  ;;  %v1727_v23 = vmax.f32 %v1719_v50, 0.0  ;;  %v1464_v1 = vadd.f32 %v3598_v52, %v3626_v44 }
 0x407   : > { %v1714_v20 = vadd.f32 %v1713_v18, %v3269_v15  ;;  %v1725_v6 = vmax.f32 %v1711_v14, 0.0  ;;  %v1502_v15 = vmax.f32 %v1448_v35, 0.0  ;;  %v1400_v14 = vadd.f32 %v3596_v51, %v3550_v37  ;;  %v1592_v18 = vld [vmem:[%s2988_s23 + $0x90] sm:$0xff] }
 0x408   : > { %v1728_v45 = vmax.f32 %v1722_v21, 0.0  ;;  %1562 = vadd.xlane.f32.xlu1 %v1504_v49  ;;  %1552 = vadd.xlane.f32.xlu0 %v1499_v62  ;;  %v1505_v49 = vmax.f32 %v1459_v0, 0.0  ;;  %v1387_v62 = vadd.f32 %v3584_v40, %v3544_v55  ;;  %v3637_v33 = vpop.permute.xlu1 %1208 }
 0x409   : > { %v1726_v47 = vmax.f32 %v1714_v20, 0.0  ;;  %v3631_v19 = vpop.permute.xlu0 %1213  ;;  %v1490_v46 = vmax.f32 %v1400_v14, 0.0 }
 0x40a   : > { %v1730_v61 = vpack.c.bf16 %v1728_v45, %v1727_v23  ;;  %v1487_v22 = vmax.f32 %v1387_v62, 0.0  ;;  %v1451_v45 = vadd.f32 %v3586_v60, %v3614_v42  ;;  %v1492_v23 = vmax.f32 %v1408_v43, 0.0 }
 0x40b   : > { %v1729_v12 = vpack.c.bf16 %v1726_v47, %v1725_v6  ;;  %v1472_v50 = vadd.f32 %v3594_v54, %v3631_v19  ;;  %v1411_v60 = vadd.f32 %v3600_v39, %v3556_v59  ;;  %v1403_v39 = vadd.f32 %v3606_v56, %v3552_v24  ;;  %v1576_v56 = vld [vmem:[%s2988_s23 + $0x10] sm:$0xff]  ;;  %v1590_v47 = vld [vmem:[%s2988_s23 + $0x80] sm:$0xff] }
 0x40c   : > { %1526 = vadd.xlane.f32.xlu1 %v1486_v17  ;;  %1532 = vadd.xlane.f32.xlu0 %v1489_v34  ;;  %v1503_v40 = vmax.f32 %v1451_v45, 0.0  ;;  %v3647_v54 = vpop.permute.xlu1 %1218  ;;  %v1574_v17 = vld [vmem:[%s2988_s23] sm:$0xff]  ;;  %v1580_v45 = vld [vmem:[%s2988_s23 + $0x30] sm:$0xff] }
 0x40d   : > { %2619 = vmatprep.subr.bf16.mxu0 %v1729_v12  ;;  %v1508_v16 = vmax.f32 %v1472_v50, 0.0  ;;  %v1475_v21 = vadd.f32 %v3602_v57, %v3647_v54  ;;  %v1491_v52 = vmax.f32 %v1403_v39, 0.0  ;;  %v1467_v57 = vadd.f32 %v3608_v8, %v3637_v33  ;;  %v1581_v39 = vld [vmem:[%s2988_s23 + $0x38] sm:$0xff] }
 0x40e   : > { %2620 = vmatpush3.bf16.msra.mxu0 %v1729_v12  ;;  %v1575_v12 = vld [vmem:[%s2988_s23 + $0x8] sm:$0xff] }
 0x40f   : > { %2621 = vmatprep.subr.bf16.mxu0 %v1730_v61  ;;  %v1509_v51 = vmax.f32 %v1475_v21, 0.0 }
 0x410   : > { %1558 = vadd.xlane.f32.xlu1 %v1502_v15  ;;  %1564 = vadd.xlane.f32.xlu0 %v1505_v49  ;;  %v1577_v15 = vld [vmem:[%s2988_s23 + $0x18] sm:$0xff] }
 0x412   : > { %2622 = vmatpush3.bf16.msra.mxu0 %v1730_v61 }
 0x414   : > { %1538 = vadd.xlane.f32.xlu1 %v1492_v23  ;;  %1528 = vadd.xlane.f32.xlu0 %v1487_v22  ;;  %v1593_v23 = vld [vmem:[%s2988_s23 + $0x98] sm:$0xff] }
 0x415   : > { %2624 = vmatmul.mubr.msk.bf16.vlgmr.msra.gmra.mrb[40].mxu0 %vm705_vm3, %v3276_v25  ;;  %v1493_v25 = vmax.f32 %v1411_v60, 0.0  ;;  %v1596_v60 = vld [vmem:[%s2988_s23 + $0xb0] sm:$0xff] }
 0x416   : > { %2627 = vmatprep.mubr.msk.bf16.mxu0 %vm705_vm3, %v3281_v26  ;;  %v1506_v26 = vmax.f32 %v1464_v1, 0.0 }
 0x418   : > { %1570 = vadd.xlane.f32.xlu1 %v1508_v16  ;;  %1560 = vadd.xlane.f32.xlu0 %v1503_v40 }
 0x41c   : > { %1534 = vadd.xlane.f32.xlu1 %v1490_v46  ;;  %1540 = vadd.xlane.f32.xlu0 %v1493_v25  ;;  %v1591_v46 = vld [vmem:[%s2988_s23 + $0x88] sm:$0xff] }
 0x41d   : > { %2628 = vmatmul.mubr.msk.bf16.gmra.mrb[44].mxu0 %vm705_vm3, %v3290_v27  ;;  %v1507_v27 = vmax.f32 %v1467_v57, 0.0 }
 0x41e   : > { %2639 = vmatprep.mubr.msk.bf16.mxu0 %vm915_vm4, %v3297_v28 }
 0x420   : > { %1566 = vadd.xlane.f32.xlu1 %v1506_v26  ;;  %1572 = vadd.xlane.f32.xlu0 %v1509_v51  ;;  %v1578_v51 = vld [vmem:[%s2988_s23 + $0x20] sm:$0xff] }
 0x424   : > { %1536 = vadd.xlane.f32.xlu0 %v1491_v52 }
 0x428   : > { %1568 = vadd.xlane.f32.xlu0 %v1507_v27 }
 0x475   : > { %v1547_v28 = vpop.xlane.xlu1 %1546  ;;  %v1515_v20 = vpop.xlane.xlu0 %1514 }
 0x476   : > { %v1624_v35 = vadd.f32 %v1592_v18, %v1547_v28  ;;  %v1608_v6 = vadd.f32 %v1576_v56, %v1515_v20  ;;  %v1594_v56 = vld [vmem:[%s2988_s23 + $0xa0] sm:$0xff]  ;;  %v1597_v28 = vld [vmem:[%s2988_s23 + $0xb8] sm:$0xff] }
 0x478   : > { %1657 = vst.msk [vmem:[%s2988_s23 + $0x90] sm:$0xff] %vm1638_vm5, %v1624_v35  ;;  %1641 = vst.msk [vmem:[%s2988_s23 + $0x10] sm:$0xff] %vm1638_vm5, %v1608_v6 }
 0x479   : > { %v1543_v8 = vpop.xlane.xlu1 %1542  ;;  %v1511_v34 = vpop.xlane.xlu0 %1510 }
 0x47a   : > { %v1622_v0 = vadd.f32 %v1590_v47, %v1543_v8  ;;  %v1606_v61 = vadd.f32 %v1574_v17, %v1511_v34  ;;  %v1584_v17 = vld [vmem:[%s2988_s23 + $0x50] sm:$0xff]  ;;  %v1579_v8 = vld [vmem:[%s2988_s23 + $0x28] sm:$0xff] }
 0x47c   : > { %1655 = vst.msk [vmem:[%s2988_s23 + $0x80] sm:$0xff] %vm1638_vm5, %v1622_v0  ;;  %1639 = vst.msk [vmem:[%s2988_s23] sm:$0xff] %vm1638_vm5, %v1606_v61 }
 0x47d   : > { %v1513_v49 = vpop.xlane.xlu1 %1512  ;;  %v1517_v62 = vpop.xlane.xlu0 %1516 }
 0x47e   : > { %v1607_v43 = vadd.f32 %v1575_v12, %v1513_v49  ;;  %v1609_v22 = vadd.f32 %v1577_v15, %v1517_v62  ;;  %v1600_v15 = vld [vmem:[%s2988_s23 + $0xd0] sm:$0xff]  ;;  %v1595_v49 = vld [vmem:[%s2988_s23 + $0xa8] sm:$0xff] }
 0x480   : > { %1640 = vst.msk [vmem:[%s2988_s23 + $0x8] sm:$0xff] %vm1638_vm5, %v1607_v43  ;;  %1642 = vst.msk [vmem:[%s2988_s23 + $0x18] sm:$0xff] %vm1638_vm5, %v1609_v22 }
 0x481   : > { %v1523_v50 = vpop.xlane.xlu1 %1522  ;;  %v1549_v40 = vpop.xlane.xlu0 %1548 }
 0x482   : > { %v1612_v16 = vadd.f32 %v1580_v45, %v1523_v50  ;;  %v1625_v14 = vadd.f32 %v1593_v23, %v1549_v40  ;;  %v1582_v23 = vld [vmem:[%s2988_s23 + $0x40] sm:$0xff]  ;;  %v1585_v50 = vld [vmem:[%s2988_s23 + $0x58] sm:$0xff] }
 0x484   : > { %1645 = vst.msk [vmem:[%s2988_s23 + $0x30] sm:$0xff] %vm1638_vm5, %v1612_v16  ;;  %1658 = vst.msk [vmem:[%s2988_s23 + $0x98] sm:$0xff] %vm1638_vm5, %v1625_v14 }
 0x485   : > { %v1555_v1 = vpop.xlane.xlu1 %1554  ;;  %v1545_v25 = vpop.xlane.xlu0 %1544 }
 0x486   : > { %v1628_v21 = vadd.f32 %v1596_v60, %v1555_v1  ;;  %v1623_v26 = vadd.f32 %v1591_v46, %v1545_v25  ;;  %v1598_v46 = vld [vmem:[%s2988_s23 + $0xc0] sm:$0xff]  ;;  %v1601_v1 = vld [vmem:[%s2988_s23 + $0xd8] sm:$0xff] }
 0x488   : > { %1661 = vst.msk [vmem:[%s2988_s23 + $0xb0] sm:$0xff] %vm1638_vm5, %v1628_v21  ;;  %1656 = vst.msk [vmem:[%s2988_s23 + $0x88] sm:$0xff] %vm1638_vm5, %v1623_v26 }
 0x489   : > { %v1519_v52 = vpop.xlane.xlu1 %1518  ;;  %v1525_v57 = vpop.xlane.xlu0 %1524 }
 0x48a   : > { %v1610_v27 = vadd.f32 %v1578_v51, %v1519_v52  ;;  %v1613_v18 = vadd.f32 %v1581_v39, %v1525_v57  ;;  %v1588_v39 = vld [vmem:[%s2988_s23 + $0x70] sm:$0xff]  ;;  %v1583_v52 = vld [vmem:[%s2988_s23 + $0x48] sm:$0xff] }
 0x48c   : > { %1643 = vst.msk [vmem:[%s2988_s23 + $0x20] sm:$0xff] %vm1638_vm5, %v1610_v27  ;;  %1646 = vst.msk [vmem:[%s2988_s23 + $0x38] sm:$0xff] %vm1638_vm5, %v1613_v18 }
 0x48d   : > { %v1551_v20 = vpop.xlane.xlu1 %1550  ;;  %v1557_v35 = vpop.xlane.xlu0 %1556 }
 0x48e   : > { %v1626_v6 = vadd.f32 %v1594_v56, %v1551_v20  ;;  %v1629_v47 = vadd.f32 %v1597_v28, %v1557_v35  ;;  %v1604_v28 = vld [vmem:[%s2988_s23 + $0xf0] sm:$0xff]  ;;  %v1599_v20 = vld [vmem:[%s2988_s23 + $0xc8] sm:$0xff] }
 0x490   : > { %1659 = vst.msk [vmem:[%s2988_s23 + $0xa0] sm:$0xff] %vm1638_vm5, %v1626_v6  ;;  %1662 = vst.msk [vmem:[%s2988_s23 + $0xb8] sm:$0xff] %vm1638_vm5, %v1629_v47 }
 0x491   : > { %v1531_v34 = vpop.xlane.xlu1 %1530  ;;  %v1521_v0 = vpop.xlane.xlu0 %1520 }
 0x492   : > { %v1616_v61 = vadd.f32 %v1584_v17, %v1531_v34  ;;  %v1611_v12 = vadd.f32 %v1579_v8, %v1521_v0  ;;  %v1586_v8 = vld [vmem:[%s2988_s23 + $0x60] sm:$0xff]  ;;  %v1589_v34 = vld [vmem:[%s2988_s23 + $0x78] sm:$0xff] }
 0x494   : > { %1649 = vst.msk [vmem:[%s2988_s23 + $0x50] sm:$0xff] %vm1638_vm5, %v1616_v61  ;;  %1644 = vst.msk [vmem:[%s2988_s23 + $0x28] sm:$0xff] %vm1638_vm5, %v1611_v12 }
 0x495   : > { %v1563_v62 = vpop.xlane.xlu1 %1562  ;;  %v1553_v43 = vpop.xlane.xlu0 %1552 }
 0x496   : > { %v1632_v22 = vadd.f32 %v1600_v15, %v1563_v62  ;;  %v1627_v45 = vadd.f32 %v1595_v49, %v1553_v43  ;;  %v1602_v49 = vld [vmem:[%s2988_s23 + $0xe0] sm:$0xff]  ;;  %v1605_v62 = vld [vmem:[%s2988_s23 + $0xf8] sm:$0xff] }
 0x498   : > { %1665 = vst.msk [vmem:[%s2988_s23 + $0xd0] sm:$0xff] %vm1638_vm5, %v1632_v22  ;;  %1660 = vst.msk [vmem:[%s2988_s23 + $0xa8] sm:$0xff] %vm1638_vm5, %v1627_v45 }
 0x499   : > { %v1527_v40 = vpop.xlane.xlu1 %1526  ;;  %v1533_v16 = vpop.xlane.xlu0 %1532 }
 0x49a   : > { %v1614_v14 = vadd.f32 %v1582_v23, %v1527_v40  ;;  %v1617_v60 = vadd.f32 %v1585_v50, %v1533_v16  ;;  %v1587_v50 = vld [vmem:[%s2988_s23 + $0x68] sm:$0xff] }
 0x49c   : > { %1647 = vst.msk [vmem:[%s2988_s23 + $0x40] sm:$0xff] %vm1638_vm5, %v1614_v14  ;;  %1650 = vst.msk [vmem:[%s2988_s23 + $0x58] sm:$0xff] %vm1638_vm5, %v1617_v60  ;;  %v1603_v14 = vld [vmem:[%s2988_s23 + $0xe8] sm:$0xff] }
 0x49d   : > { %v1559_v25 = vpop.xlane.xlu1 %1558  ;;  %v1565_v21 = vpop.xlane.xlu0 %1564 }
 0x49e   : > { %v1630_v26 = vadd.f32 %v1598_v46, %v1559_v25  ;;  %v1633_v51 = vadd.f32 %v1601_v1, %v1565_v21 }
 0x4a0   : > { %1663 = vst.msk [vmem:[%s2988_s23 + $0xc0] sm:$0xff] %vm1638_vm5, %v1630_v26  ;;  %1666 = vst.msk [vmem:[%s2988_s23 + $0xd8] sm:$0xff] %vm1638_vm5, %v1633_v51 }
 0x4a1   : > { %v1539_v57 = vpop.xlane.xlu1 %1538  ;;  %v1529_v27 = vpop.xlane.xlu0 %1528 }
 0x4a2   : > { %v1620_v18 = vadd.f32 %v1588_v39, %v1539_v57  ;;  %v1615_v56 = vadd.f32 %v1583_v52, %v1529_v27 }
 0x4a4   : > { %1653 = vst.msk [vmem:[%s2988_s23 + $0x70] sm:$0xff] %vm1638_vm5, %v1620_v18  ;;  %1648 = vst.msk [vmem:[%s2988_s23 + $0x48] sm:$0xff] %vm1638_vm5, %v1615_v56 }
 0x4a5   : > { %v1571_v35 = vpop.xlane.xlu1 %1570  ;;  %v1561_v6 = vpop.xlane.xlu0 %1560 }
 0x4a6   : > { %v1636_v47 = vadd.f32 %v1604_v28, %v1571_v35  ;;  %v1631_v17 = vadd.f32 %v1599_v20, %v1561_v6 }
 0x4a8   : > { %1669 = vst.msk [vmem:[%s2988_s23 + $0xf0] sm:$0xff] %vm1638_vm5, %v1636_v47  ;;  %1664 = vst.msk [vmem:[%s2988_s23 + $0xc8] sm:$0xff] %vm1638_vm5, %v1631_v17 }
 0x4a9   : > { %v1535_v0 = vpop.xlane.xlu1 %1534  ;;  %v1541_v61 = vpop.xlane.xlu0 %1540 }
 0x4aa   : > { %v1618_v12 = vadd.f32 %v1586_v8, %v1535_v0  ;;  %v1621_v15 = vadd.f32 %v1589_v34, %v1541_v61 }
 0x4ac   : > { %1651 = vst.msk [vmem:[%s2988_s23 + $0x60] sm:$0xff] %vm1638_vm5, %v1618_v12  ;;  %1654 = vst.msk [vmem:[%s2988_s23 + $0x78] sm:$0xff] %vm1638_vm5, %v1621_v15 }
 0x4ad   : > { %v1567_v43 = vpop.xlane.xlu1 %1566  ;;  %v1573_v22 = vpop.xlane.xlu0 %1572 }
 0x4ae   : > { %v1634_v45 = vadd.f32 %v1602_v49, %v1567_v43  ;;  %v1637_v23 = vadd.f32 %v1605_v62, %v1573_v22 }
 0x4b0   : > { %1667 = vst.msk [vmem:[%s2988_s23 + $0xe0] sm:$0xff] %vm1638_vm5, %v1634_v45  ;;  %1670 = vst.msk [vmem:[%s2988_s23 + $0xf8] sm:$0xff] %vm1638_vm5, %v1637_v23 }
 0x4b1   : > { %v1537_v40 = vpop.xlane.xlu0 %1536 }
 0x4b2   : > { %v1619_v16 = vadd.f32 %v1587_v50, %v1537_v40 }
 0x4b4   : > { %1652 = vst.msk [vmem:[%s2988_s23 + $0x68] sm:$0xff] %vm1638_vm5, %v1619_v16 }
 0x4b5   : > { %v1569_v60 = vpop.xlane.xlu0 %1568 }
 0x4b6   : > { %v1635_v46 = vadd.f32 %v1603_v14, %v1569_v60 }
 0x4b8   : > { %1668 = vst.msk [vmem:[%s2988_s23 + $0xe8] sm:$0xff] %vm1638_vm5, %v1635_v46 }
 0x4e8   : > { %v2625_v1 = vpop.f32.mrb[40].mxu0 }
 0x4e9   : > { %v1774_v25 = vadd.f32 %v2625_v1, %v3305_v31  ;;  %v1765_v21 = vpop.f32.mrb[41].mxu0  ;;  %v4074_v1 = vld [vmem:[#allocation8_spill] sm:$0xff] }
 0x4ea   : > { %v1766_v26 = vadd.f32 %v1765_v21, %v3301_v29  ;;  %v2626_v51 = vpop.f32.mrb[42].mxu0 }
 0x4eb   : > { %v1777_v39 = vadd.f32 %v2626_v51, %v3307_v32  ;;  %v1768_v52 = vpop.f32.mrb[43].mxu0  ;;  %v1798_v27 = vmax.f32 %v1774_v25, 0.0 }
 0x4ec   : > { %v1769_v57 = vadd.f32 %v1768_v52, %v3303_v30  ;;  %v1796_v56 = vmax.f32 %v1766_v26, 0.0  ;;  %v4075_v26 = vld [vmem:[#allocation11_spill] sm:$0xff]  ;;  %v4076_v52 = vld [vmem:[#allocation9_spill] sm:$0xff] }
 0x4ed   : > { %v1799_v18 = vmax.f32 %v1777_v39, 0.0 }
 0x4ee   : > { %v1797_v28 = vmax.f32 %v1769_v57, 0.0 }
 0x4ef   : > { %v1805_v20 = vpack.c.bf16 %v1799_v18, %v1798_v27 }
 0x4f0   : > { %v1804_v35 = vpack.c.bf16 %v1797_v28, %v1796_v56  ;;  %v2629_v6 = vpop.f32.mrb[44].mxu0 }
 0x4f1   : > { %v1790_v47 = vadd.f32 %v2629_v6, %v3317_v48  ;;  %v1781_v17 = vpop.f32.mrb[45].mxu0 }
 0x4f2   : > { %v1782_v31 = vadd.f32 %v1781_v17, %v3310_v36  ;;  %v2630_v8 = vpop.f32.mrb[46].mxu0  ;;  %2631 = vmatprep.subr.bf16.mxu0 %v1804_v35 }
 0x4f3   : > { %v1793_v29 = vadd.f32 %v2630_v8, %v3320_v53  ;;  %v1784_v32 = vpop.f32.mrb[47].mxu0  ;;  %2632 = vmatpush3.bf16.msra.mxu0 %v1804_v35  ;;  %v1802_v34 = vmax.f32 %v1790_v47, 0.0  ;;  %v4077_v47 = vld [vmem:[#allocation14_spill] sm:$0xff]  ;;  %v4078_v8 = vld [vmem:[#allocation12_spill] sm:$0xff] }
 0x4f4   : > { %v1785_v30 = vadd.f32 %v1784_v32, %v3314_v41  ;;  %2633 = vmatprep.subr.bf16.mxu0 %v1805_v20  ;;  %v1800_v61 = vmax.f32 %v1782_v31, 0.0  ;;  %v4069_v41 = vld [vmem:[#allocation6_spill] sm:$0xff] }
 0x4f5   : > { %v1803_v0 = vmax.f32 %v1793_v29, 0.0 }
 0x4f6   : > { %v1801_v12 = vmax.f32 %v1785_v30, 0.0  ;;  %v4079_v30 = vld [vmem:[#allocation15_spill] sm:$0xff] }
 0x4f7   : > { %v1807_v15 = vpack.c.bf16 %v1803_v0, %v1802_v34  ;;  %2634 = vmatpush3.bf16.msra.mxu0 %v1805_v20 }
 0x4f8   : > { %v1806_v49 = vpack.c.bf16 %v1801_v12, %v1800_v61  ;;  %v4080_v61 = vld [vmem:[#allocation13_spill] sm:$0xff] }
 0x4fa   : > { %2635 = vmatprep.subr.bf16.mxu0 %v1806_v49 }
 0x4fb   : > { %2636 = vmatpush3.bf16.msra.mxu0 %v1806_v49 }
 0x4fc   : > { %2637 = vmatprep.subr.bf16.mxu0 %v1807_v15 }
 0x4ff   : > { %2638 = vmatpush3.bf16.msra.mxu0 %v1807_v15 }
 0x502   : > { %2640 = vmatmul.mubr.msk.bf16.vlgmr.msra.gmra.mrb[48].mxu0 %vm915_vm4, %v3328_v2  ;;  %v4070_v2 = vld [vmem:[#allocation4_spill] sm:$0xff] }
 0x503   : > { %2643 = vmatprep.mubr.msk.bf16.mxu0 %vm915_vm4, %v3333_v3 }
 0x50a   : > { %2644 = vmatmul.mubr.msk.bf16.gmra.mrb[52].mxu0 %vm915_vm4, %v3342_v4  ;;  %v4071_v4 = vld [vmem:[#allocation7_spill] sm:$0xff] }
 0x50b   : > { %2647 = vmatprep.mubr.msk.bf16.mxu0 %vm915_vm4, %v3347_v7  ;;  %v4072_v7 = vld [vmem:[#allocation5_spill] sm:$0xff] }
 0x512   : > { %2648 = vmatmul.mubr.msk.bf16.gmra.mrb[56].mxu0 %vm915_vm4, %v3356_v10 }
 0x513   : > { %2651 = vmatprep.mubr.msk.bf16.mxu0 %vm915_vm4, %v3361_v11 }
 0x51a   : > { %2652 = vmatmul.mubr.msk.bf16.gmra.mrb[60].mxu0 %vm915_vm4, %v3370_v13  ;;  %v4073_v13 = vld [vmem:[#allocation10_spill] sm:$0xff] }
 0x5d5   : > { %v2641_v36 = vpop.f32.mrb[48].mxu0 }
 0x5d6   : > { %v1851_v48 = vadd.f32 %v2641_v36, %v4069_v41  ;;  %v1842_v53 = vpop.f32.mrb[49].mxu0 }
 0x5d7   : > { %v1843_v3 = vadd.f32 %v1842_v53, %v4070_v2  ;;  %v2642_v62 = vpop.f32.mrb[50].mxu0 }
 0x5d8   : > { %v1854_v43 = vadd.f32 %v2642_v62, %v4071_v4  ;;  %v1845_v22 = vpop.f32.mrb[51].mxu0  ;;  %v1907_v23 = vmax.f32 %v1851_v48, 0.0 }
 0x5d9   : > { %v1846_v45 = vadd.f32 %v1845_v22, %v4072_v7  ;;  %v1905_v50 = vmax.f32 %v1843_v3, 0.0  ;;  %v4081_v3 = vld [vmem:[#allocation18_spill] sm:$0xff] }
 0x5da   : > { %v1908_v10 = vmax.f32 %v1854_v43, 0.0  ;;  %v4082_v43 = vld [vmem:[#allocation16_spill] sm:$0xff] }
 0x5db   : > { %v1906_v40 = vmax.f32 %v1846_v45, 0.0  ;;  %v4083_v45 = vld [vmem:[#allocation19_spill] sm:$0xff] }
 0x5dc   : > { %v1922_v11 = vpack.c.bf16 %v1908_v10, %v1907_v23 }
 0x5dd   : > { %v1921_v16 = vpack.c.bf16 %v1906_v40, %v1905_v50  ;;  %v2645_v14 = vpop.f32.mrb[52].mxu0  ;;  %v4084_v50 = vld [vmem:[#allocation17_spill] sm:$0xff] }
 0x5de   : > { %v1867_v60 = vadd.f32 %v2645_v14, %v4073_v13  ;;  %v1858_v46 = vpop.f32.mrb[53].mxu0 }
 0x5df   : > { %v1859_v25 = vadd.f32 %v1858_v46, %v4074_v1  ;;  %v2646_v21 = vpop.f32.mrb[54].mxu0  ;;  %2655 = vmatprep.subr.bf16.mxu1 %v1921_v16  ;;  %v4085_v1 = vld [vmem:[#allocation20_spill] sm:$0xff] }
 0x5e0   : > { %v1870_v51 = vadd.f32 %v2646_v21, %v4075_v26  ;;  %v1861_v39 = vpop.f32.mrb[55].mxu0  ;;  %2656 = vmatpush3.bf16.msra.mxu1 %v1921_v16  ;;  %v1911_v27 = vmax.f32 %v1867_v60, 0.0  ;;  %v4087_v21 = vld [vmem:[#allocation24_spill] sm:$0xff]  ;;  %v4088_v26 = vld [vmem:[#allocation26_spill] sm:$0xff] }
 0x5e1   : > { %v1862_v57 = vadd.f32 %v1861_v39, %v4076_v52  ;;  %2657 = vmatprep.subr.bf16.mxu1 %v1922_v11  ;;  %v1909_v56 = vmax.f32 %v1859_v25, 0.0  ;;  %v4086_v25 = vld [vmem:[#allocation22_spill] sm:$0xff]  ;;  %v4091_v52 = vld [vmem:[#allocation32_spill] sm:$0xff] }
 0x5e2   : > { %v1912_v18 = vmax.f32 %v1870_v51, 0.0  ;;  %v4089_v51 = vld [vmem:[#allocation28_spill] sm:$0xff]  ;;  %v4090_v39 = vld [vmem:[#allocation30_spill] sm:$0xff] }
 0x5e3   : > { %v1910_v28 = vmax.f32 %v1862_v57, 0.0  ;;  %v2811_v57 = vld [vmem:[%s3968_s7 + $0x40] sm:$0xff]  }
 0x5e4   : > { %v1924_v20 = vpack.c.bf16 %v1912_v18, %v1911_v27  ;;  %2658 = vmatpush3.bf16.msra.mxu1 %v1922_v11  ;;  %v4092_v27 = vld [vmem:[#allocation21_spill] sm:$0xff]  ;;  %v4093_v18 = vld [vmem:[#allocation23_spill] sm:$0xff] }
 0x5e5   : > { %v1923_v35 = vpack.c.bf16 %v1910_v28, %v1909_v56  ;;  %v2649_v6 = vpop.f32.mrb[56].mxu0  ;;  %v4094_v56 = vld [vmem:[#allocation25_spill] sm:$0xff]  ;;  %v4095_v28 = vld [vmem:[#allocation27_spill] sm:$0xff] }
 0x5e6   : > { %v1883_v17 = vadd.f32 %v2649_v6, %v4077_v47  ;;  %v1874_v31 = vpop.f32.mrb[57].mxu0  ;;  %v4098_v6 = vld [vmem:[#allocation33_spill] sm:$0xff] }
 0x5e7   : > { %v1875_v29 = vadd.f32 %v1874_v31, %v4078_v8  ;;  %v2650_v32 = vpop.f32.mrb[58].mxu0  ;;  %2659 = vmatprep.subr.bf16.mxu1 %v1923_v35 }
 0x5e8   : > { %v1886_v34 = vadd.f32 %v2650_v32, %v4079_v30  ;;  %v1877_v0 = vpop.f32.mrb[59].mxu0  ;;  %2660 = vmatpush3.bf16.msra.mxu1 %v1923_v35  ;;  %v1915_v15 = vmax.f32 %v1883_v17, 0.0  ;;  %v4097_v35 = vld [vmem:[#allocation31_spill] sm:$0xff]  ;;  %v4099_v17 = vld [vmem:[#allocation36_spill] sm:$0xff]  ;;  %v4100_v30 = vld [vmem:[#allocation34_spill] sm:$0xff] }
 0x5e9   : > { %v1878_v12 = vadd.f32 %v1877_v0, %v4080_v61  ;;  %2661 = vmatprep.subr.bf16.mxu1 %v1924_v20  ;;  %v1913_v36 = vmax.f32 %v1875_v29, 0.0  ;;  %v4101_v0 = vld [vmem:[#allocation37_spill] sm:$0xff] }
 0x5ea   : > { %v1916_v49 = vmax.f32 %v1886_v34, 0.0 }
 0x5eb   : > { %v1914_v41 = vmax.f32 %v1878_v12, 0.0 }
 0x5ec   : > { %v1926_v48 = vpack.c.bf16 %v1916_v49, %v1915_v15  ;;  %2662 = vmatpush3.bf16.msra.mxu1 %v1924_v20  ;;  %v4096_v20 = vld [vmem:[#allocation29_spill] sm:$0xff]  ;;  %v4102_v49 = vld [vmem:[#allocation35_spill] sm:$0xff] }
 0x5ed   : > { %v1925_v53 = vpack.c.bf16 %v1914_v41, %v1913_v36  ;;  %v2653_v2 = vpop.f32.mrb[60].mxu0 }
 0x5ee   : > { %v1899_v62 = vadd.f32 %v2653_v2, %v4081_v3  ;;  %v1890_v4 = vpop.f32.mrb[61].mxu0  ;;  %v4103_v2 = vld [vmem:[#allocation40_spill] sm:$0xff] }
 0x5ef   : > { %v1891_v22 = vadd.f32 %v1890_v4, %v4082_v43  ;;  %v2654_v7 = vpop.f32.mrb[62].mxu0  ;;  %2663 = vmatprep.subr.bf16.mxu1 %v1925_v53 }
 0x5f0   : > { %v1902_v23 = vadd.f32 %v2654_v7, %v4083_v45  ;;  %v1893_v10 = vpop.f32.mrb[63].mxu0  ;;  %2664 = vmatpush3.bf16.msra.mxu1 %v1925_v53  ;;  %v1919_v11 = vmax.f32 %v1899_v62, 0.0  ;;  %v4105_v45 = vld [vmem:[#allocation41_spill] sm:$0xff] }
 0x5f1   : > { %v1894_v40 = vadd.f32 %v1893_v10, %v4084_v50  ;;  %2665 = vmatprep.subr.bf16.mxu1 %v1926_v48  ;;  %v1917_v14 = vmax.f32 %v1891_v22, 0.0  ;;  %v4104_v22 = vld [vmem:[#allocation38_spill] sm:$0xff] }
 0x5f2   : > { %v1920_v16 = vmax.f32 %v1902_v23, 0.0 }
 0x5f3   : > { %v1918_v13 = vmax.f32 %v1894_v40, 0.0  ;;  %v4106_v40 = vld [vmem:[#allocation39_spill] sm:$0xff] }
 0x5f4   : > { %v1928_v60 = vpack.c.bf16 %v1920_v16, %v1919_v11  ;;  %2666 = vmatpush3.bf16.msra.mxu1 %v1926_v48 }
 0x5f5   : > { %v1927_v46 = vpack.c.bf16 %v1918_v13, %v1917_v14 }
 0x5f7   : > { %2667 = vmatprep.subr.bf16.mxu1 %v1927_v46 }
 0x5f8   : > { %2668 = vmatpush3.bf16.msra.mxu1 %v1927_v46 }
 0x5f9   : > { %2669 = vmatprep.subr.bf16.mxu1 %v1928_v60 }
 0x5fc   : > { %2670 = vmatpush3.bf16.msra.mxu1 %v1928_v60  ;;  %v4107_v60 = vld [vmem:[#allocation42_spill] sm:$0xff] }
 0x5ff   : > { %2672 = vmatmul.mubr.bf16.vlgmr.msra.gmra.mrb[24].mxu1 %v4085_v1 }
 0x600   : > { %2675 = vmatprep.mubr.bf16.mxu1 %v4086_v25 }
 0x607   : > { %2676 = vmatmul.mubr.bf16.gmra.mrb[28].mxu1 %v4087_v21 }
 0x608   : > { %2679 = vmatprep.mubr.bf16.mxu1 %v4088_v26 }
 0x60f   : > { %2680 = vmatmul.mubr.bf16.gmra.mrb[32].mxu1 %v4089_v51 }
 0x610   : > { %2683 = vmatprep.mubr.bf16.mxu1 %v4090_v39 }
 0x617   : > { %2684 = vmatmul.mubr.bf16.gmra.mrb[36].mxu1 %v4091_v52 }
 0x618   : > { %2687 = vmatprep.mubr.bf16.mxu1 %v2811_v57 }
 0x61f   : > { %2688 = vmatmul.mubr.bf16.gmra.mrb[40].mxu1 %v4092_v27 }
 0x620   : > { %2691 = vmatprep.mubr.bf16.mxu1 %v4093_v18 }
 0x627   : > { %2692 = vmatmul.mubr.bf16.gmra.mrb[44].mxu1 %v4094_v56 }
 0x628   : > { %2695 = vmatprep.mubr.bf16.mxu1 %v4095_v28 }
 0x62f   : > { %2696 = vmatmul.mubr.bf16.gmra.mrb[48].mxu1 %v4096_v20 }
 0x630   : > { %2699 = vmatprep.mubr.bf16.mxu1 %v4097_v35 }
 0x637   : > { %2700 = vmatmul.mubr.bf16.gmra.mrb[52].mxu1 %v4098_v6 }
 0x6d2   : > { %v2673_v47 = vpop.f32.mrb[24].mxu1 }
 0x6d3   : > { %v1972_v31 = vadd.f32 %v2673_v47, %v4099_v17  ;;  %v1963_v8 = vpop.f32.mrb[25].mxu1 }
 0x6d4   : > { %v2674_v29 = vpop.f32.mrb[26].mxu1  ;;  %v1964_v34 = vadd.f32 %v1963_v8, %v4100_v30 }
 0x6d5   : > { %v2092_v32 = vmax.f32 %v1972_v31, 0.0  ;;  %v1975_v61 = vadd.f32 %v2674_v29, %v4101_v0  ;;  %v1966_v12 = vpop.f32.mrb[27].mxu1 }
 0x6d6   : > { %v1967_v36 = vadd.f32 %v1966_v12, %v4102_v49  ;;  %v2090_v41 = vmax.f32 %v1964_v34, 0.0  ;;  %v4110_v12 = vld [vmem:[#allocation46_spill] sm:$0xff] }
 0x6d7   : > { %v2093_v15 = vmax.f32 %v1975_v61, 0.0  ;;  %2126 = vadd.xlane.f32.xlu1 %v2092_v32  ;;  %v4108_v32 = vld [vmem:[#allocation45_spill] sm:$0xff]  ;;  %v4109_v61 = vld [vmem:[#allocation43_spill] sm:$0xff] }
 0x6d8   : > { %v2091_v53 = vmax.f32 %v1967_v36, 0.0  ;;  %v4111_v36 = vld [vmem:[#allocation44_spill] sm:$0xff] }
 0x6d9   : > { %2128 = vadd.xlane.f32.xlu0 %v2093_v15 }
 0x6da   : > { %v2677_v48 = vpop.f32.mrb[28].mxu1 }
 0x6db   : > { %v1988_v3 = vadd.f32 %v2677_v48, %v4103_v2  ;;  %v1979_v62 = vpop.f32.mrb[29].mxu1  ;;  %2122 = vadd.xlane.f32.xlu1 %v2090_v41  ;;  %v4112_v2 = vld [vmem:[#allocation48_spill] sm:$0xff] }
 0x6dc   : > { %v2678_v4 = vpop.f32.mrb[30].mxu1  ;;  %v1980_v7 = vadd.f32 %v1979_v62, %v4104_v22  ;;  %v4113_v22 = vld [vmem:[#allocation47_spill] sm:$0xff] }
 0x6dd   : > { %v2096_v43 = vmax.f32 %v1988_v3, 0.0  ;;  %v1991_v23 = vadd.f32 %v2678_v4, %v4105_v45  ;;  %v1982_v10 = vpop.f32.mrb[31].mxu1  ;;  %2124 = vadd.xlane.f32.xlu0 %v2091_v53  ;;  %v4114_v45 = vld [vmem:[#allocation50_spill] sm:$0xff] }
 0x6de   : > { %v1983_v11 = vadd.f32 %v1982_v10, %v4106_v40  ;;  %v2094_v16 = vmax.f32 %v1980_v7, 0.0  ;;  %v4115_v40 = vld [vmem:[#allocation49_spill] sm:$0xff] }
 0x6df   : > { %v2097_v50 = vmax.f32 %v1991_v23, 0.0  ;;  %2134 = vadd.xlane.f32.xlu1 %v2096_v43 }
 0x6e0   : > { %v2095_v13 = vmax.f32 %v1983_v11, 0.0 }
 0x6e1   : > { %2136 = vadd.xlane.f32.xlu0 %v2097_v50 }
 0x6e2   : > { %v2681_v14 = vpop.f32.mrb[32].mxu1 }
 0x6e3   : > { %v2004_v46 = vadd.f32 %v2681_v14, %v4107_v60  ;;  %v1995_v1 = vpop.f32.mrb[33].mxu1  ;;  %2130 = vadd.xlane.f32.xlu1 %v2094_v16  ;;  %v4116_v60 = vld [vmem:[#allocation51_spill] sm:$0xff] }
 0x6e4   : > { %v2682_v25 = vpop.f32.mrb[34].mxu1  ;;  %v1996_v26 = vadd.f32 %v1995_v1, %v3542_v9 }
 0x6e5   : > { %v2100_v21 = vmax.f32 %v2004_v46, 0.0  ;;  %v2007_v51 = vadd.f32 %v2682_v25, %v3548_v38  ;;  %v1998_v39 = vpop.f32.mrb[35].mxu1  ;;  %2132 = vadd.xlane.f32.xlu0 %v2095_v13 }
 0x6e6   : > { %v1999_v57 = vadd.f32 %v1998_v39, %v3544_v55  ;;  %v2098_v27 = vmax.f32 %v1996_v26, 0.0 }
 0x6e7   : > { %v2101_v52 = vmax.f32 %v2007_v51, 0.0  ;;  %2142 = vadd.xlane.f32.xlu1 %v2100_v21 }
 0x6e8   : > { %v2099_v56 = vmax.f32 %v1999_v57, 0.0 }
 0x6e9   : > { %2144 = vadd.xlane.f32.xlu0 %v2101_v52 }
 0x6ea   : > { %v2685_v18 = vpop.f32.mrb[36].mxu1 }
 0x6eb   : > { %v2020_v28 = vadd.f32 %v2685_v18, %v3554_v63  ;;  %v2011_v20 = vpop.f32.mrb[37].mxu1  ;;  %2138 = vadd.xlane.f32.xlu1 %v2098_v27 }
 0x6ec   : > { %v2686_v35 = vpop.f32.mrb[38].mxu1  ;;  %v2012_v9 = vadd.f32 %v2011_v20, %v3550_v37 }
 0x6ed   : > { %v2104_v6 = vmax.f32 %v2020_v28, 0.0  ;;  %v2023_v38 = vadd.f32 %v2686_v35, %v3556_v59  ;;  %v2014_v47 = vpop.f32.mrb[39].mxu1  ;;  %2140 = vadd.xlane.f32.xlu0 %v2099_v56 }
 0x6ee   : > { %v2015_v55 = vadd.f32 %v2014_v47, %v3552_v24  ;;  %v2102_v31 = vmax.f32 %v2012_v9, 0.0 }
 0x6ef   : > { %v2105_v17 = vmax.f32 %v2023_v38, 0.0  ;;  %2150 = vadd.xlane.f32.xlu1 %v2104_v6 }
 0x6f0   : > { %v2103_v29 = vmax.f32 %v2015_v55, 0.0 }
 0x6f1   : > { %2152 = vadd.xlane.f32.xlu0 %v2105_v17  ;;  %v2188_v17 = vld [vmem:[%s2988_s23 + $0x10] sm:$0xff] }
 0x6f2   : > { %v2689_v8 = vpop.f32.mrb[40].mxu1 }
 0x6f3   : > { %v2036_v63 = vadd.f32 %v2689_v8, %v4108_v32  ;;  %v2027_v30 = vpop.f32.mrb[41].mxu1  ;;  %2146 = vadd.xlane.f32.xlu1 %v2102_v31 }
 0x6f4   : > { %v2690_v34 = vpop.f32.mrb[42].mxu1  ;;  %v2028_v37 = vadd.f32 %v2027_v30, %v4109_v61 }
 0x6f5   : > { %v2108_v0 = vmax.f32 %v2036_v63, 0.0  ;;  %v2039_v59 = vadd.f32 %v2690_v34, %v4110_v12  ;;  %v2030_v15 = vpop.f32.mrb[43].mxu1  ;;  %2148 = vadd.xlane.f32.xlu0 %v2103_v29  ;;  %v2186_v29 = vld [vmem:[%s2988_s23] sm:$0xff]  ;;  %v2187_v63 = vld [vmem:[%s2988_s23 + $0x8] sm:$0xff]  ;;  %v2193_v12 = vld [vmem:[%s2988_s23 + $0x38] sm:$0xff] }
 0x6f6   : > { %v2031_v24 = vadd.f32 %v2030_v15, %v4111_v36  ;;  %v2106_v41 = vmax.f32 %v2028_v37, 0.0 }
 0x6f7   : > { %v2109_v49 = vmax.f32 %v2039_v59, 0.0  ;;  %2158 = vadd.xlane.f32.xlu1 %v2108_v0  ;;  %v2192_v0 = vld [vmem:[%s2988_s23 + $0x30] sm:$0xff] }
 0x6f8   : > { %v2107_v53 = vmax.f32 %v2031_v24, 0.0 }
 0x6f9   : > { %2160 = vadd.xlane.f32.xlu0 %v2109_v49  ;;  %v2190_v49 = vld [vmem:[%s2988_s23 + $0x20] sm:$0xff] }
 0x6fa   : > { %v2693_v48 = vpop.f32.mrb[44].mxu1 }
 0x6fb   : > { %v2052_v3 = vadd.f32 %v2693_v48, %v4112_v2  ;;  %v2043_v62 = vpop.f32.mrb[45].mxu1  ;;  %2154 = vadd.xlane.f32.xlu1 %v2106_v41  ;;  %v2191_v41 = vld [vmem:[%s2988_s23 + $0x28] sm:$0xff]  ;;  %v2196_v2 = vld [vmem:[%s2988_s23 + $0x50] sm:$0xff] }
 0x6fc   : > { %v2694_v4 = vpop.f32.mrb[46].mxu1  ;;  %v2044_v7 = vadd.f32 %v2043_v62, %v4113_v22 }
 0x6fd   : > { %v2112_v43 = vmax.f32 %v2052_v3, 0.0  ;;  %v2055_v23 = vadd.f32 %v2694_v4, %v4114_v45  ;;  %v2046_v10 = vpop.f32.mrb[47].mxu1  ;;  %2156 = vadd.xlane.f32.xlu0 %v2107_v53  ;;  %v2197_v4 = vld [vmem:[%s2988_s23 + $0x58] sm:$0xff] }
 0x6fe   : > { %v2047_v11 = vadd.f32 %v2046_v10, %v4115_v40  ;;  %v2110_v16 = vmax.f32 %v2044_v7, 0.0  ;;  %v2194_v7 = vld [vmem:[%s2988_s23 + $0x40] sm:$0xff]  ;;  %v2195_v10 = vld [vmem:[%s2988_s23 + $0x48] sm:$0xff] }
 0x6ff   : > { %v2113_v50 = vmax.f32 %v2055_v23, 0.0  ;;  %2166 = vadd.xlane.f32.xlu1 %v2112_v43 }
 0x700   : > { %v2111_v13 = vmax.f32 %v2047_v11, 0.0  ;;  %v2200_v11 = vld [vmem:[%s2988_s23 + $0x70] sm:$0xff] }
 0x701   : > { %2168 = vadd.xlane.f32.xlu0 %v2113_v50 }
 0x702   : > { %v2697_v14 = vpop.f32.mrb[48].mxu1 }
 0x703   : > { %v2068_v46 = vadd.f32 %v2697_v14, %v4116_v60  ;;  %v2059_v1 = vpop.f32.mrb[49].mxu1  ;;  %2162 = vadd.xlane.f32.xlu1 %v2110_v16 }
 0x704   : > { %v2698_v25 = vpop.f32.mrb[50].mxu1  ;;  %v2060_v26 = vadd.f32 %v2059_v1, %v3590_v58  ;;  %v2198_v1 = vld [vmem:[%s2988_s23 + $0x60] sm:$0xff] }
 0x705   : > { %v2116_v21 = vmax.f32 %v2068_v46, 0.0  ;;  %v2071_v51 = vadd.f32 %v2698_v25, %v3622_v5  ;;  %v2062_v39 = vpop.f32.mrb[51].mxu1  ;;  %2164 = vadd.xlane.f32.xlu0 %v2111_v13  ;;  %v2201_v13 = vld [vmem:[%s2988_s23 + $0x78] sm:$0xff] }
 0x706   : > { %v2063_v57 = vadd.f32 %v2062_v39, %v3614_v42  ;;  %v2114_v27 = vmax.f32 %v2060_v26, 0.0  ;;  %v2199_v26 = vld [vmem:[%s2988_s23 + $0x68] sm:$0xff] }
 0x707   : > { %v2117_v52 = vmax.f32 %v2071_v51, 0.0  ;;  %2174 = vadd.xlane.f32.xlu1 %v2116_v21 }
 0x708   : > { %v2115_v56 = vmax.f32 %v2063_v57, 0.0 }
 0x709   : > { %2176 = vadd.xlane.f32.xlu0 %v2117_v52  ;;  %v2204_v52 = vld [vmem:[%s2988_s23 + $0x90] sm:$0xff] }
 0x70a   : > { %v2701_v18 = vpop.f32.mrb[52].mxu1 }
 0x70b   : > { %v2075_v28 = vpop.f32.mrb[53].mxu1  ;;  %2170 = vadd.xlane.f32.xlu1 %v2114_v27  ;;  %v2084_v58 = vadd.f32 %v2701_v18, %v3631_v19  ;;  %v2205_v18 = vld [vmem:[%s2988_s23 + $0x98] sm:$0xff] }
 0x70c   : > { %v2076_v20 = vadd.f32 %v2075_v28, %v3626_v44  ;;  %v2702_v35 = vpop.f32.mrb[54].mxu1 }
 0x70d   : > { %v2078_v6 = vpop.f32.mrb[55].mxu1  ;;  %2172 = vadd.xlane.f32.xlu0 %v2115_v56  ;;  %v2087_v9 = vadd.f32 %v2702_v35, %v3647_v54  ;;  %v2120_v47 = vmax.f32 %v2084_v58, 0.0  ;;  %v2203_v58 = vld [vmem:[%s2988_s23 + $0x88] sm:$0xff] }
 0x70e   : > { %v2118_v5 = vmax.f32 %v2076_v20, 0.0  ;;  %v2079_v42 = vadd.f32 %v2078_v6, %v3637_v33  ;;  %v2189_v33 = vld [vmem:[%s2988_s23 + $0x18] sm:$0xff]  ;;  %v2202_v20 = vld [vmem:[%s2988_s23 + $0x80] sm:$0xff] }
 0x70f   : > { %v2121_v44 = vmax.f32 %v2087_v9, 0.0  ;;  %v2208_v9 = vld [vmem:[%s2988_s23 + $0xb0] sm:$0xff] }
 0x710   : > { %v2119_v38 = vmax.f32 %v2079_v42, 0.0  ;;  %2178 = vadd.xlane.f32.xlu1 %v2118_v5 }
 0x712   : > { %2180 = vadd.xlane.f32.xlu0 %v2119_v38 }
 0x714   : > { %2182 = vadd.xlane.f32.xlu1 %v2120_v47 }
 0x716   : > { %2184 = vadd.xlane.f32.xlu0 %v2121_v44  ;;  %v2209_v44 = vld [vmem:[%s2988_s23 + $0xb8] sm:$0xff] }
 0x764   : > { %v2127_v19 = vpop.xlane.xlu1 %2126 }
 0x765   : > { %v2220_v55 = vadd.f32 %v2188_v17, %v2127_v19 }
 0x766   : > { %v2129_v54 = vpop.xlane.xlu0 %2128 }
 0x767   : > { %2253 = vst.msk [vmem:[%s2988_s23 + $0x10] sm:$0xff] %vm2250_vm6, %v2220_v55  ;;  %v2221_v31 = vadd.f32 %v2189_v33, %v2129_v54  ;;  %v2206_v55 = vld [vmem:[%s2988_s23 + $0xa0] sm:$0xff] }
 0x768   : > { %v2123_v8 = vpop.xlane.xlu1 %2122 }
 0x769   : > { %2254 = vst.msk [vmem:[%s2988_s23 + $0x18] sm:$0xff] %vm2250_vm6, %v2221_v31  ;;  %v2218_v32 = vadd.f32 %v2186_v29, %v2123_v8  ;;  %v2207_v31 = vld [vmem:[%s2988_s23 + $0xa8] sm:$0xff] }
 0x76a   : > { %v2125_v30 = vpop.xlane.xlu0 %2124 }
 0x76b   : > { %2251 = vst.msk [vmem:[%s2988_s23] sm:$0xff] %vm2250_vm6, %v2218_v32  ;;  %v2219_v34 = vadd.f32 %v2187_v63, %v2125_v30  ;;  %v2212_v32 = vld [vmem:[%s2988_s23 + $0xd0] sm:$0xff] }
 0x76c   : > { %v2135_v61 = vpop.xlane.xlu1 %2134 }
 0x76d   : > { %2252 = vst.msk [vmem:[%s2988_s23 + $0x8] sm:$0xff] %vm2250_vm6, %v2219_v34  ;;  %v2224_v37 = vadd.f32 %v2192_v0, %v2135_v61  ;;  %v2213_v34 = vld [vmem:[%s2988_s23 + $0xd8] sm:$0xff] }
 0x76e   : > { %v2137_v59 = vpop.xlane.xlu0 %2136 }
 0x76f   : > { %2257 = vst.msk [vmem:[%s2988_s23 + $0x30] sm:$0xff] %vm2250_vm6, %v2224_v37  ;;  %v2225_v15 = vadd.f32 %v2193_v12, %v2137_v59  ;;  %v2210_v37 = vld [vmem:[%s2988_s23 + $0xc0] sm:$0xff] }
 0x770   : > { %v2131_v36 = vpop.xlane.xlu1 %2130 }
 0x771   : > { %2258 = vst.msk [vmem:[%s2988_s23 + $0x38] sm:$0xff] %vm2250_vm6, %v2225_v15  ;;  %v2222_v24 = vadd.f32 %v2190_v49, %v2131_v36  ;;  %v2211_v15 = vld [vmem:[%s2988_s23 + $0xc8] sm:$0xff] }
 0x772   : > { %v2133_v48 = vpop.xlane.xlu0 %2132 }
 0x773   : > { %2255 = vst.msk [vmem:[%s2988_s23 + $0x20] sm:$0xff] %vm2250_vm6, %v2222_v24  ;;  %v2223_v53 = vadd.f32 %v2191_v41, %v2133_v48  ;;  %v2214_v24 = vld [vmem:[%s2988_s23 + $0xe0] sm:$0xff] }
 0x774   : > { %v2143_v3 = vpop.xlane.xlu1 %2142 }
 0x775   : > { %2256 = vst.msk [vmem:[%s2988_s23 + $0x28] sm:$0xff] %vm2250_vm6, %v2223_v53  ;;  %v2228_v62 = vadd.f32 %v2196_v2, %v2143_v3  ;;  %v2215_v53 = vld [vmem:[%s2988_s23 + $0xe8] sm:$0xff] }
 0x776   : > { %v2145_v43 = vpop.xlane.xlu0 %2144 }
 0x777   : > { %2261 = vst.msk [vmem:[%s2988_s23 + $0x50] sm:$0xff] %vm2250_vm6, %v2228_v62  ;;  %v2229_v22 = vadd.f32 %v2197_v4, %v2145_v43  ;;  %v2216_v62 = vld [vmem:[%s2988_s23 + $0xf0] sm:$0xff] }
 0x778   : > { %v2139_v45 = vpop.xlane.xlu1 %2138 }
 0x779   : > { %2262 = vst.msk [vmem:[%s2988_s23 + $0x58] sm:$0xff] %vm2250_vm6, %v2229_v22  ;;  %v2226_v23 = vadd.f32 %v2194_v7, %v2139_v45  ;;  %v2217_v22 = vld [vmem:[%s2988_s23 + $0xf8] sm:$0xff] }
 0x77a   : > { %v2141_v50 = vpop.xlane.xlu0 %2140 }
 0x77b   : > { %2259 = vst.msk [vmem:[%s2988_s23 + $0x40] sm:$0xff] %vm2250_vm6, %v2226_v23  ;;  %v2227_v40 = vadd.f32 %v2195_v10, %v2141_v50 }
 0x77c   : > { %v2151_v16 = vpop.xlane.xlu1 %2150 }
 0x77d   : > { %2260 = vst.msk [vmem:[%s2988_s23 + $0x48] sm:$0xff] %vm2250_vm6, %v2227_v40  ;;  %v2232_v14 = vadd.f32 %v2200_v11, %v2151_v16 }
 0x77e   : > { %v2153_v60 = vpop.xlane.xlu0 %2152 }
 0x77f   : > { %2265 = vst.msk [vmem:[%s2988_s23 + $0x70] sm:$0xff] %vm2250_vm6, %v2232_v14  ;;  %v2233_v46 = vadd.f32 %v2201_v13, %v2153_v60 }
 0x780   : > { %v2147_v25 = vpop.xlane.xlu1 %2146 }
 0x781   : > { %2266 = vst.msk [vmem:[%s2988_s23 + $0x78] sm:$0xff] %vm2250_vm6, %v2233_v46  ;;  %v2230_v21 = vadd.f32 %v2198_v1, %v2147_v25 }
 0x782   : > { %v2149_v51 = vpop.xlane.xlu0 %2148 }
 0x783   : > { %2263 = vst.msk [vmem:[%s2988_s23 + $0x60] sm:$0xff] %vm2250_vm6, %v2230_v21  ;;  %v2231_v39 = vadd.f32 %v2199_v26, %v2149_v51 }
 0x784   : > { %v2159_v57 = vpop.xlane.xlu1 %2158 }
 0x785   : > { %2264 = vst.msk [vmem:[%s2988_s23 + $0x68] sm:$0xff] %vm2250_vm6, %v2231_v39  ;;  %v2236_v27 = vadd.f32 %v2204_v52, %v2159_v57 }
 0x786   : > { %v2161_v56 = vpop.xlane.xlu0 %2160 }
 0x787   : > { %2269 = vst.msk [vmem:[%s2988_s23 + $0x90] sm:$0xff] %vm2250_vm6, %v2236_v27  ;;  %v2237_v28 = vadd.f32 %v2205_v18, %v2161_v56 }
 0x788   : > { %v2155_v35 = vpop.xlane.xlu1 %2154 }
 0x789   : > { %2270 = vst.msk [vmem:[%s2988_s23 + $0x98] sm:$0xff] %vm2250_vm6, %v2237_v28  ;;  %v2234_v6 = vadd.f32 %v2202_v20, %v2155_v35 }
 0x78a   : > { %v2157_v5 = vpop.xlane.xlu0 %2156 }
 0x78b   : > { %2267 = vst.msk [vmem:[%s2988_s23 + $0x80] sm:$0xff] %vm2250_vm6, %v2234_v6  ;;  %v2235_v42 = vadd.f32 %v2203_v58, %v2157_v5 }
 0x78c   : > { %v2167_v38 = vpop.xlane.xlu1 %2166 }
 0x78d   : > { %2268 = vst.msk [vmem:[%s2988_s23 + $0x88] sm:$0xff] %vm2250_vm6, %v2235_v42  ;;  %v2240_v47 = vadd.f32 %v2208_v9, %v2167_v38 }
 0x78e   : > { %v2169_v17 = vpop.xlane.xlu0 %2168 }
 0x78f   : > { %2273 = vst.msk [vmem:[%s2988_s23 + $0xb0] sm:$0xff] %vm2250_vm6, %v2240_v47  ;;  %v2241_v19 = vadd.f32 %v2209_v44, %v2169_v17 }
 0x790   : > { %v2163_v33 = vpop.xlane.xlu1 %2162 }
 0x791   : > { %2274 = vst.msk [vmem:[%s2988_s23 + $0xb8] sm:$0xff] %vm2250_vm6, %v2241_v19  ;;  %v2238_v54 = vadd.f32 %v2206_v55, %v2163_v33 }
 0x792   : > { %v2165_v8 = vpop.xlane.xlu0 %2164 }
 0x793   : > { %2271 = vst.msk [vmem:[%s2988_s23 + $0xa0] sm:$0xff] %vm2250_vm6, %v2238_v54  ;;  %v2239_v29 = vadd.f32 %v2207_v31, %v2165_v8 }
 0x794   : > { %v2175_v63 = vpop.xlane.xlu1 %2174 }
 0x795   : > { %2272 = vst.msk [vmem:[%s2988_s23 + $0xa8] sm:$0xff] %vm2250_vm6, %v2239_v29  ;;  %v2244_v30 = vadd.f32 %v2212_v32, %v2175_v63 }
 0x796   : > { %v2177_v0 = vpop.xlane.xlu0 %2176 }
 0x797   : > { %2277 = vst.msk [vmem:[%s2988_s23 + $0xd0] sm:$0xff] %vm2250_vm6, %v2244_v30  ;;  %v2245_v61 = vadd.f32 %v2213_v34, %v2177_v0 }
 0x798   : > { %v2171_v12 = vpop.xlane.xlu1 %2170 }
 0x799   : > { %2278 = vst.msk [vmem:[%s2988_s23 + $0xd8] sm:$0xff] %vm2250_vm6, %v2245_v61  ;;  %v2242_v59 = vadd.f32 %v2210_v37, %v2171_v12 }
 0x79a   : > { %v2173_v49 = vpop.xlane.xlu0 %2172 }
 0x79b   : > { %2275 = vst.msk [vmem:[%s2988_s23 + $0xc0] sm:$0xff] %vm2250_vm6, %v2242_v59  ;;  %v2243_v36 = vadd.f32 %v2211_v15, %v2173_v49 }
 0x79d   : > { %2276 = vst.msk [vmem:[%s2988_s23 + $0xc8] sm:$0xff] %vm2250_vm6, %v2243_v36  ;;  %v2179_v41 = vpop.xlane.xlu1 %2178 }
 0x79e   : > { %v2246_v48 = vadd.f32 %v2214_v24, %v2179_v41 }
 0x79f   : > { %v2181_v2 = vpop.xlane.xlu0 %2180 }
 0x7a0   : > { %2279 = vst.msk [vmem:[%s2988_s23 + $0xe0] sm:$0xff] %vm2250_vm6, %v2246_v48  ;;  %v2247_v3 = vadd.f32 %v2215_v53, %v2181_v2 }
 0x7a1   : > { %v2183_v4 = vpop.xlane.xlu1 %2182 }
 0x7a2   : > { %2280 = vst.msk [vmem:[%s2988_s23 + $0xe8] sm:$0xff] %vm2250_vm6, %v2247_v3  ;;  %v2248_v43 = vadd.f32 %v2216_v62, %v2183_v4 }
 0x7a3   : > { %v2185_v7 = vpop.xlane.xlu0 %2184 }
 0x7a4   : > { %2281 = vst.msk [vmem:[%s2988_s23 + $0xf0] sm:$0xff] %vm2250_vm6, %v2248_v43  ;;  %v2249_v45 = vadd.f32 %v2217_v22, %v2185_v7 }
 0x7a6   : > { %2282 = vst.msk [vmem:[%s2988_s23 + $0xf8] sm:$0xff] %vm2250_vm6, %v2249_v45 }
 0x7a7 PF: > { %s19_s15 = sadd.s32 1, %s2866_s15   ;;  %s4117_s12 = sld [smem:[#allocation3_spill]] }
 0x7a8   : > { %p16_p12 = scmp.ge.s32.totalorder %s19_s15, 6   ;;  %s4118_s30 = smov %s2846_s10 }
 0x7a9   : > { %s4119_s10 = smov %s2971_s24  ;;  %s4120_s11 = smov %s2858_s13 }
 0x7aa   : > { %s4121_s13 = smov %s4124_s16  ;;  %s4122_s14 = smov %s4128_s17 }
 0x7ab   :  { %18 = sbr.rel (!%p16_p12) target bundleno = 4 (0x4), region = 130 }

</bundles_post_ra>
